<compile_context>
chip_gen: v7x
topology: tpu7x:2x2x1
jax: 0.10.0
libtpu: 0.0.40
codegen_flags: <defaults>
</compile_context>

<pallas_src>
import functools

import jax
import jax.numpy as jnp
from jax.experimental import pallas as pl
from jax.experimental.pallas import tpu as pltpu


_LANE = 128
_NEG_BIG = -1e30  # padding logit value -> exp underflows to exactly 0


def _round_up(n, m):
    return ((n + m - 1) // m) * m


def _layernorm(h, gamma, beta, eps=1e-5):
    mu = jnp.mean(h, axis=-1, keepdims=True)
    d = h - mu
    var = jnp.mean(d * d, axis=-1, keepdims=True)
    return d * jax.lax.rsqrt(var + eps) * gamma + beta


def _build_kernel(D, H, FW, d_aligned):
    """Fused forward kernel for static sizes D (input_dim), H (hidden_dim)."""
    D4 = 4 * D

    def kernel(*refs):
        (x_ref, wx_ref, bx_ref, sg_ref, sbeta_ref, sw2p_ref, sb2p_ref,
         iw1_ref, ib1_ref, ig_ref, ibeta_ref, iw2p_ref, ib2p_ref) = refs[:13]
        if d_aligned:
            branches_ref, fi_ref, weights_ref = refs[13:16]
            selbc_ref = foldp_ref = None
        else:
            selbc_ref, foldp_ref, branches_ref, fi_ref, weights_ref = refs[13:18]

        x = x_ref[...]                                      # [TB, D] f32

        # ---- ONE x-side matmul: branches (4 stand-in sub-modules) + selector
        # pre-activation.  Weights may be bf16; accumulation stays f32.
        xw = (jnp.dot(x.astype(wx_ref.dtype), wx_ref[...],
                      preferred_element_type=jnp.float32) + bx_ref[...])   # [TB, 4D+H]
        branches = xw[:, :D4]                               # [TB, 4D]
        h = xw[:, D4:D4 + H]                                # [TB, H]

        # ---- reasoning_selector tail: LayerNorm -> ReLU -> Linear(pad 128) -> softmax
        h = jnp.maximum(_layernorm(h, sg_ref[...], sbeta_ref[...]), 0.0)
        logits = (jnp.dot(h, sw2p_ref[...], preferred_element_type=jnp.float32)
                  + sb2p_ref[...])                          # [TB, 128]; lanes >= 4 are -1e30
        m = jnp.max(logits, axis=-1, keepdims=True)
        e = jnp.exp(logits - m)                             # padded lanes -> exactly 0
        # exact reciprocal keeps the softmax within the 1e-5 reference tolerance
        w = e * pl.reciprocal(jnp.sum(e, axis=-1, keepdims=True), approx=False)

        # ---- weighted integration
        if d_aligned:
            # D % 128 == 0 -> branch slices are vreg-aligned; pure VPU work.
            integ_p = (w[:, 0:1] * branches[:, 0 * D:1 * D]
                       + w[:, 1:2] * branches[:, 1 * D:2 * D]
                       + w[:, 2:3] * branches[:, 2 * D:3 * D]
                       + w[:, 3:4] * branches[:, 3 * D:4 * D])      # [TB, D] (FW == D)
        else:
            # small / unaligned D: constant 0/1 broadcast + fold matrices on the MXU
            wb = jnp.dot(w, selbc_ref[...], preferred_element_type=jnp.float32)  # [TB,4D]
            weighted = wb * branches
            integ_p = jnp.dot(weighted, foldp_ref[...],
                              preferred_element_type=jnp.float32)                # [TB,FW]

        # ---- output_integrator on cat(branches): single K=4D matmul
        h2 = (jnp.dot(branches.astype(iw1_ref.dtype), iw1_ref[...],
                      preferred_element_type=jnp.float32) + ib1_ref[...])
        h2 = jnp.maximum(_layernorm(h2, ig_ref[...], ibeta_ref[...]), 0.0)
        final_p = (jnp.dot(h2, iw2p_ref[...], preferred_element_type=jnp.float32)
                   + ib2p_ref[...])                         # [TB, FW]; lanes >= D are 0

        # ---- lane-dense stores; final & integrated packed into one output stream
        branches_ref[...] = branches
        fi_ref[:, 0:FW] = final_p
        fi_ref[:, FW:2 * FW] = integ_p
        weights_ref[...] = w

    return kernel


def init_params(key, input_dim, hidden_dim):
    """Deterministic parameter init (uniform, scaled by 1/sqrt(fan_in))."""
    ks = jax.random.split(key, 8)

    def lin(k, fan_in, fan_out):
        bound = 1.0 / jnp.sqrt(jnp.float32(fan_in))
        kw, kb = jax.random.split(k)
        w = jax.random.uniform(kw, (fan_in, fan_out), jnp.float32, -bound, bound)
        b = jax.random.uniform(kb, (1, fan_out), jnp.float32, -bound, bound)
        return w, b

    p = {}
    # four branch stand-ins (see TODO at top of file)
    p["wc"], p["bc"] = lin(ks[0], input_dim, input_dim)
    p["wa"], p["ba"] = lin(ks[1], input_dim, input_dim)
    p["wcf"], p["bcf"] = lin(ks[2], input_dim, input_dim)
    p["wp"], p["bp"] = lin(ks[3], input_dim, input_dim)
    # reasoning_selector
    p["sw1"], p["sb1"] = lin(ks[4], input_dim, hidden_dim)
    p["sg"] = jnp.ones((1, hidden_dim), jnp.float32)
    p["sbeta"] = jnp.zeros((1, hidden_dim), jnp.float32)
    p["sw2"], p["sb2"] = lin(ks[5], hidden_dim, 4)
    # output_integrator
    p["iw1"], p["ib1"] = lin(ks[6], input_dim * 4, hidden_dim)
    p["ig"] = jnp.ones((1, hidden_dim), jnp.float32)
    p["ibeta"] = jnp.zeros((1, hidden_dim), jnp.float32)
    p["iw2"], p["ib2"] = lin(ks[7], hidden_dim, input_dim)
    return p


def prepare_params(params, use_bf16=False):
    """One-time parameter fusion / padding (call once, NOT per forward)."""
    D = params["wc"].shape[0]
    H = params["sw1"].shape[1]
    D4 = 4 * D
    FW = _round_up(D, _LANE)
    mm_dtype = jnp.bfloat16 if use_bf16 else jnp.float32

    # x-side fused projection: four branches + selector first Linear
    wx = jnp.concatenate([params["wc"], params["wa"], params["wcf"], params["wp"],
                          params["sw1"]], axis=1).astype(mm_dtype)           # [D, 4D+H]
    bx = jnp.concatenate([params["bc"], params["ba"], params["bcf"], params["bp"],
                          params["sb1"]], axis=1)                            # [1, 4D+H]

    # lane-dense padded output projections (kept f32 for accuracy)
    sw2p = jnp.zeros((H, _LANE), jnp.float32).at[:, :4].set(params["sw2"])
    sb2p = jnp.full((1, _LANE), _NEG_BIG, jnp.float32).at[:, :4].set(params["sb2"])
    iw2p = jnp.zeros((H, FW), jnp.float32).at[:, :D].set(params["iw2"])
    ib2p = jnp.zeros((1, FW), jnp.float32).at[:, :D].set(params["ib2"])

    prep = {
        "wx": wx, "bx": bx,
        "sg": params["sg"], "sbeta": params["sbeta"], "sw2p": sw2p, "sb2p": sb2p,
        "iw1": params["iw1"].astype(mm_dtype), "ib1": params["ib1"],
        "ig": params["ig"], "ibeta": params["ibeta"], "iw2p": iw2p, "ib2p": ib2p,
    }
    if D % _LANE != 0:
        # constant broadcast / fold matrices for the unaligned weighted integration
        prep["selbc"] = (jnp.arange(D4)[None, :] // D
                         == jnp.arange(_LANE)[:, None]).astype(jnp.float32)  # [128, 4D]
        prep["foldp"] = (jnp.arange(D4)[:, None] % D
                         == jnp.arange(FW)[None, :]).astype(jnp.float32)     # [4D, FW]
    return prep


@functools.partial(jax.jit, static_argnames=("single_buffer_consts",))
def enhanced_reasoning_forward(x, prep, single_buffer_consts=True):
    B, D = x.shape
    H = prep["iw1"].shape[1]
    D4 = 4 * D
    FW = _round_up(D, _LANE)
    d_aligned = "foldp" not in prep

    # ---- batch tiling: sublane-aligned tile, 1-D "parallel" grid over batch ----
    TB = min(256, _round_up(B, 8))
    B_pad = _round_up(B, TB)
    if B_pad // TB < 2 and B_pad >= 64:
        # give v7x's two TensorCores >= 2 parallel grid steps to share
        TB = _round_up((B_pad + 1) // 2, 8)
        B_pad = _round_up(B, TB)
    x_p = jnp.pad(x, ((0, B_pad - B), (0, 0)))
    grid = (B_pad // TB,)

    def const_spec(a):
        idx = lambda i: (0, 0)
        if single_buffer_consts and hasattr(pl, "Buffered"):
            try:
                # grid-invariant resident weights: single buffer, not double
                return pl.BlockSpec(a.shape, idx, pipeline_mode=pl.Buffered(1))
            except TypeError:
                pass
        return pl.BlockSpec(a.shape, idx)

    def row_spec(width):
        return pl.BlockSpec((TB, width), lambda i: (i, 0))

    consts = [prep["wx"], prep["bx"], prep["sg"], prep["sbeta"], prep["sw2p"],
              prep["sb2p"], prep["iw1"], prep["ib1"], prep["ig"], prep["ibeta"],
              prep["iw2p"], prep["ib2p"]]
    if not d_aligned:
        consts += [prep["selbc"], prep["foldp"]]

    out_shapes = (
        jax.ShapeDtypeStruct((B_pad, D4), jnp.float32),       # fused branch outputs
        jax.ShapeDtypeStruct((B_pad, 2 * FW), jnp.float32),   # [final | integrated]
        jax.ShapeDtypeStruct((B_pad, _LANE), jnp.float32),    # reasoning weights (padded)
    )

    branches, fi, w_p = pl.pallas_call(
        _build_kernel(D, H, FW, d_aligned),
        out_shape=out_shapes,
        grid=grid,
        in_specs=[row_spec(D)] + [const_spec(c) for c in consts],
        out_specs=(row_spec(D4), row_spec(2 * FW), row_spec(_LANE)),
        compiler_params=pltpu.CompilerParams(
            dimension_semantics=("parallel",),
            # 48 MiB: above the v5e (16 MiB) / v6e-v7x (32 MiB) scoped defaults,
            # safely under v7x's 64 MiB physical VMEM.
            vmem_limit_bytes=48 * 1024 * 1024,
        ),
    )(x_p, *consts)

    return {
        "output": fi[:B, :D],
        "integrated_output": fi[:B, FW:FW + D],
        "reasoning_weights": w_p[:B, :4],
        "causal_output": branches[:B, 0 * D:1 * D],
        "analogical_output": branches[:B, 1 * D:2 * D],
        "counterfactual_output": branches[:B, 2 * D:3 * D],
        "planning_output": branches[:B, 3 * D:4 * D],
    }


def reference_forward(x, p):
    """Pure-JAX reference for correctness check."""
    def ln(h, g, b):
        mu = jnp.mean(h, -1, keepdims=True)
        var = jnp.mean((h - mu) ** 2, -1, keepdims=True)
        return (h - mu) / jnp.sqrt(var + 1e-5) * g + b

    causal = x @ p["wc"] + p["bc"]
    analog = x @ p["wa"] + p["ba"]
    cf = x @ p["wcf"] + p["bcf"]
    plan = x @ p["wp"] + p["bp"]
    h = jnp.maximum(ln(x @ p["sw1"] + p["sb1"], p["sg"], p["sbeta"]), 0.0)
    w = jax.nn.softmax(h @ p["sw2"] + p["sb2"], axis=-1)
    integ = (w[:, 0:1] * causal + w[:, 1:2] * analog
             + w[:, 2:3] * cf + w[:, 3:4] * plan)
    cat = jnp.concatenate([causal, analog, cf, plan], axis=-1)
    h2 = jnp.maximum(ln(cat @ p["iw1"] + p["ib1"], p["ig"], p["ibeta"]), 0.0)
    final = h2 @ p["iw2"] + p["ib2"]
    return final, integ, w, (causal, analog, cf, plan)


def _run_forward(x, prep):
    # Prefer single-buffered resident weights (halves their VMEM footprint).  If
    # this Pallas build rejects pl.Buffered(1) for grid-invariant blocks, fall
    # back to the default double-buffered pipeline.
    try:
        out = enhanced_reasoning_forward(x, prep)
        return jax.block_until_ready(out)
    except Exception:
        out = enhanced_reasoning_forward(x, prep, single_buffer_consts=False)
        return jax.block_until_ready(out)


if __name__ == "__main__":
    key = jax.random.PRNGKey(0)

    def check(out, x, params, atol, watol):
        ref_final, ref_integ, ref_w, ref_br = reference_forward(x, params)
        assert jnp.allclose(out["output"], ref_final, atol=atol, rtol=atol)
        assert jnp.allclose(out["integrated_output"], ref_integ, atol=atol, rtol=atol)
        assert jnp.allclose(out["reasoning_weights"], ref_w, atol=watol, rtol=watol)
        names = ("causal_output", "analogical_output",
                 "counterfactual_output", "planning_output")
        for name, ref in zip(names, ref_br):
            assert jnp.allclose(out[name], ref, atol=atol, rtol=atol), name

    # 1) small, lane-unaligned D=32 (exercises the MXU broadcast/fold integration path)
    kx, kp, key = jax.random.split(key, 3)
    x = jax.random.normal(kx, (4, 32), jnp.float32)
    params = init_params(kp, 32, 64)
    prep_f32 = prepare_params(params)                 # f32 everywhere
    out = _run_forward(x, prep_f32)
    check(out, x, params, atol=1e-4, watol=1e-5)

    # 2) lane-aligned D=128 (exercises the VPU integration path, no selbc/foldp)
    kx2, kp2, key = jax.random.split(key, 3)
    x2 = jax.random.normal(kx2, (4, 128), jnp.float32)
    params2 = init_params(kp2, 128, 64)
    out2 = _run_forward(x2, prepare_params(params2))
    check(out2, x2, params2, atol=1e-4, watol=1e-5)

    # 3) bf16 fast-path smoke test (MXU fast mode on v6e/v7x); looser tolerance
    out3 = _run_forward(x, prepare_params(params, use_bf16=True))
    check(out3, x, params, atol=5e-2, watol=5e-2)

    print("KERNEL_OK")
</pallas_src>

<mosaic_0001>
module attributes {stable_mosaic.version = 11 : i64} {
  func.func @kernel(%arg0: i32, %arg1: memref<8x32xf32, #tpu.memory_space<vmem>>, %arg2: memref<32x192xf32, #tpu.memory_space<vmem>>, %arg3: memref<1x192xf32, #tpu.memory_space<vmem>>, %arg4: memref<1x64xf32, #tpu.memory_space<vmem>>, %arg5: memref<1x64xf32, #tpu.memory_space<vmem>>, %arg6: memref<64x128xf32, #tpu.memory_space<vmem>>, %arg7: memref<1x128xf32, #tpu.memory_space<vmem>>, %arg8: memref<128x64xf32, #tpu.memory_space<vmem>>, %arg9: memref<1x64xf32, #tpu.memory_space<vmem>>, %arg10: memref<1x64xf32, #tpu.memory_space<vmem>>, %arg11: memref<1x64xf32, #tpu.memory_space<vmem>>, %arg12: memref<64x128xf32, #tpu.memory_space<vmem>>, %arg13: memref<1x128xf32, #tpu.memory_space<vmem>>, %arg14: memref<128x128xf32, #tpu.memory_space<vmem>>, %arg15: memref<128x128xf32, #tpu.memory_space<vmem>>, %arg16: memref<8x128xf32, #tpu.memory_space<vmem>>, %arg17: memref<8x256xf32, #tpu.memory_space<vmem>>, %arg18: memref<8x128xf32, #tpu.memory_space<vmem>>) attributes {dimension_semantics = [#tpu.dimension_semantics<parallel>], iteration_bounds = array<i64: 1>, scalar_prefetch = 0 : i64, scratch_operands = 0 : i64, tpu.core_type = #tpu.core_type<tc>, window_params = [{transform_indices = @transform_0, window_bounds = array<i64: 8, 32>}, {pipeline_mode = #tpu.pipeline_mode<synchronous>, transform_indices = @transform_1, window_bounds = array<i64: 32, 192>}, {pipeline_mode = #tpu.pipeline_mode<synchronous>, transform_indices = @transform_2, window_bounds = array<i64: 1, 192>}, {pipeline_mode = #tpu.pipeline_mode<synchronous>, transform_indices = @transform_3, window_bounds = array<i64: 1, 64>}, {pipeline_mode = #tpu.pipeline_mode<synchronous>, transform_indices = @transform_4, window_bounds = array<i64: 1, 64>}, {pipeline_mode = #tpu.pipeline_mode<synchronous>, transform_indices = @transform_5, window_bounds = array<i64: 64, 128>}, {pipeline_mode = #tpu.pipeline_mode<synchronous>, transform_indices = @transform_6, window_bounds = array<i64: 1, 128>}, {pipeline_mode = #tpu.pipeline_mode<synchronous>, transform_indices = @transform_7, window_bounds = array<i64: 128, 64>}, {pipeline_mode = #tpu.pipeline_mode<synchronous>, transform_indices = @transform_8, window_bounds = array<i64: 1, 64>}, {pipeline_mode = #tpu.pipeline_mode<synchronous>, transform_indices = @transform_9, window_bounds = array<i64: 1, 64>}, {pipeline_mode = #tpu.pipeline_mode<synchronous>, transform_indices = @transform_10, window_bounds = array<i64: 1, 64>}, {pipeline_mode = #tpu.pipeline_mode<synchronous>, transform_indices = @transform_11, window_bounds = array<i64: 64, 128>}, {pipeline_mode = #tpu.pipeline_mode<synchronous>, transform_indices = @transform_12, window_bounds = array<i64: 1, 128>}, {pipeline_mode = #tpu.pipeline_mode<synchronous>, transform_indices = @transform_13, window_bounds = array<i64: 128, 128>}, {pipeline_mode = #tpu.pipeline_mode<synchronous>, transform_indices = @transform_14, window_bounds = array<i64: 128, 128>}, {transform_indices = @transform_15, window_bounds = array<i64: 8, 128>}, {transform_indices = @transform_16, window_bounds = array<i64: 8, 256>}, {transform_indices = @transform_17, window_bounds = array<i64: 8, 128>}]} {
    %c0 = arith.constant 0 : index
    %c0_0 = arith.constant 0 : index
    %0 = vector.load %arg1[%c0, %c0_0] : memref<8x32xf32, #tpu.memory_space<vmem>>, vector<8x32xf32>
    %c0_1 = arith.constant 0 : index
    %c0_2 = arith.constant 0 : index
    %1 = vector.load %arg2[%c0_1, %c0_2] : memref<32x192xf32, #tpu.memory_space<vmem>>, vector<32x192xf32>
    %cst = arith.constant dense<0.000000e+00> : vector<8x192xf32>
    %2 = tpu.matmul %0, %1, %cst {dimension_numbers = #tpu.dot_dimension_numbers<[1], [0], [0], [1], [0, 0, 1, 1], [], []>} : vector<8x32xf32>, vector<32x192xf32>, vector<8x192xf32> -> vector<8x192xf32>
    %c0_3 = arith.constant 0 : index
    %c0_4 = arith.constant 0 : index
    %3 = vector.load %arg3[%c0_3, %c0_4] : memref<1x192xf32, #tpu.memory_space<vmem>>, vector<1x192xf32>
    %4 = vector.broadcast %3 : vector<1x192xf32> to vector<8x192xf32>
    %5 = arith.addf %2, %4 : vector<8x192xf32>
    %6 = vector.extract_strided_slice %5 {offsets = [0, 0], sizes = [8, 128], strides = [1, 1]} : vector<8x192xf32> to vector<8x128xf32>
    %7 = vector.extract_strided_slice %5 {offsets = [0, 128], sizes = [8, 64], strides = [1, 1]} : vector<8x192xf32> to vector<8x64xf32>
    %c0_5 = arith.constant 0 : index
    %c0_6 = arith.constant 0 : index
    %8 = vector.load %arg4[%c0_5, %c0_6] : memref<1x64xf32, #tpu.memory_space<vmem>>, vector<1x64xf32>
    %c0_7 = arith.constant 0 : index
    %c0_8 = arith.constant 0 : index
    %9 = vector.load %arg5[%c0_7, %c0_8] : memref<1x64xf32, #tpu.memory_space<vmem>>, vector<1x64xf32>
    %cst_9 = arith.constant dense<0.000000e+00> : vector<8xf32>
    %10 = vector.multi_reduction <add>, %7, %cst_9 [1] : vector<8x64xf32> to vector<8xf32>
    %11 = vector.shape_cast %10 : vector<8xf32> to vector<8x1xf32>
    %cst_10 = arith.constant 6.400000e+01 : f32
    %12 = vector.broadcast %cst_10 : f32 to vector<8x1xf32>
    %13 = arith.divf %11, %12 : vector<8x1xf32>
    %14 = vector.broadcast %13 : vector<8x1xf32> to vector<8x64xf32>
    %15 = arith.subf %7, %14 : vector<8x64xf32>
    %16 = arith.mulf %15, %15 : vector<8x64xf32>
    %cst_11 = arith.constant dense<0.000000e+00> : vector<8xf32>
    %17 = vector.multi_reduction <add>, %16, %cst_11 [1] : vector<8x64xf32> to vector<8xf32>
    %18 = vector.shape_cast %17 : vector<8xf32> to vector<8x1xf32>
    %cst_12 = arith.constant 6.400000e+01 : f32
    %19 = vector.broadcast %cst_12 : f32 to vector<8x1xf32>
    %20 = arith.divf %18, %19 : vector<8x1xf32>
    %cst_13 = arith.constant 9.99999974E-6 : f32
    %21 = vector.broadcast %cst_13 : f32 to vector<8x1xf32>
    %22 = arith.addf %20, %21 : vector<8x1xf32>
    %23 = math.rsqrt %22 : vector<8x1xf32>
    %24 = vector.broadcast %23 : vector<8x1xf32> to vector<8x64xf32>
    %25 = arith.mulf %15, %24 : vector<8x64xf32>
    %26 = vector.broadcast %8 : vector<1x64xf32> to vector<8x64xf32>
    %27 = arith.mulf %25, %26 : vector<8x64xf32>
    %28 = vector.broadcast %9 : vector<1x64xf32> to vector<8x64xf32>
    %29 = arith.addf %27, %28 : vector<8x64xf32>
    %cst_14 = arith.constant 0.000000e+00 : f32
    %30 = vector.broadcast %cst_14 : f32 to vector<8x64xf32>
    %31 = arith.maximumf %29, %30 : vector<8x64xf32>
    %c0_15 = arith.constant 0 : index
    %c0_16 = arith.constant 0 : index
    %32 = vector.load %arg6[%c0_15, %c0_16] : memref<64x128xf32, #tpu.memory_space<vmem>>, vector<64x128xf32>
    %cst_17 = arith.constant dense<0.000000e+00> : vector<8x128xf32>
    %33 = tpu.matmul %31, %32, %cst_17 {dimension_numbers = #tpu.dot_dimension_numbers<[1], [0], [0], [1], [0, 0, 1, 1], [], []>} : vector<8x64xf32>, vector<64x128xf32>, vector<8x128xf32> -> vector<8x128xf32>
    %c0_18 = arith.constant 0 : index
    %c0_19 = arith.constant 0 : index
    %34 = vector.load %arg7[%c0_18, %c0_19] : memref<1x128xf32, #tpu.memory_space<vmem>>, vector<1x128xf32>
    %35 = vector.broadcast %34 : vector<1x128xf32> to vector<8x128xf32>
    %36 = arith.addf %33, %35 : vector<8x128xf32>
    %cst_20 = arith.constant dense<0xFF800000> : vector<8xf32>
    %37 = vector.multi_reduction <maximumf>, %36, %cst_20 [1] : vector<8x128xf32> to vector<8xf32>
    %38 = vector.shape_cast %37 : vector<8xf32> to vector<8x1xf32>
    %39 = vector.broadcast %38 : vector<8x1xf32> to vector<8x128xf32>
    %40 = arith.subf %36, %39 : vector<8x128xf32>
    %41 = math.exp %40 : vector<8x128xf32>
    %cst_21 = arith.constant dense<0.000000e+00> : vector<8xf32>
    %42 = vector.multi_reduction <add>, %41, %cst_21 [1] : vector<8x128xf32> to vector<8xf32>
    %43 = vector.shape_cast %42 : vector<8xf32> to vector<8x1xf32>
    %44 = tpu.reciprocal %43 : vector<8x1xf32> -> vector<8x1xf32>
    %45 = vector.broadcast %44 : vector<8x1xf32> to vector<8x128xf32>
    %46 = arith.mulf %41, %45 : vector<8x128xf32>
    %c0_22 = arith.constant 0 : index
    %c0_23 = arith.constant 0 : index
    %47 = vector.load %arg14[%c0_22, %c0_23] : memref<128x128xf32, #tpu.memory_space<vmem>>, vector<128x128xf32>
    %cst_24 = arith.constant dense<0.000000e+00> : vector<8x128xf32>
    %48 = tpu.matmul %46, %47, %cst_24 {dimension_numbers = #tpu.dot_dimension_numbers<[1], [0], [0], [1], [0, 0, 1, 1], [], []>} : vector<8x128xf32>, vector<128x128xf32>, vector<8x128xf32> -> vector<8x128xf32>
    %49 = arith.mulf %48, %6 : vector<8x128xf32>
    %c0_25 = arith.constant 0 : index
    %c0_26 = arith.constant 0 : index
    %50 = vector.load %arg15[%c0_25, %c0_26] : memref<128x128xf32, #tpu.memory_space<vmem>>, vector<128x128xf32>
    %cst_27 = arith.constant dense<0.000000e+00> : vector<8x128xf32>
    %51 = tpu.matmul %49, %50, %cst_27 {dimension_numbers = #tpu.dot_dimension_numbers<[1], [0], [0], [1], [0, 0, 1, 1], [], []>} : vector<8x128xf32>, vector<128x128xf32>, vector<8x128xf32> -> vector<8x128xf32>
    %c0_28 = arith.constant 0 : index
    %c0_29 = arith.constant 0 : index
    %52 = vector.load %arg8[%c0_28, %c0_29] : memref<128x64xf32, #tpu.memory_space<vmem>>, vector<128x64xf32>
    %cst_30 = arith.constant dense<0.000000e+00> : vector<8x64xf32>
    %53 = tpu.matmul %6, %52, %cst_30 {dimension_numbers = #tpu.dot_dimension_numbers<[1], [0], [0], [1], [0, 0, 1, 1], [], []>} : vector<8x128xf32>, vector<128x64xf32>, vector<8x64xf32> -> vector<8x64xf32>
    %c0_31 = arith.constant 0 : index
    %c0_32 = arith.constant 0 : index
    %54 = vector.load %arg9[%c0_31, %c0_32] : memref<1x64xf32, #tpu.memory_space<vmem>>, vector<1x64xf32>
    %55 = vector.broadcast %54 : vector<1x64xf32> to vector<8x64xf32>
    %56 = arith.addf %53, %55 : vector<8x64xf32>
    %c0_33 = arith.constant 0 : index
    %c0_34 = arith.constant 0 : index
    %57 = vector.load %arg10[%c0_33, %c0_34] : memref<1x64xf32, #tpu.memory_space<vmem>>, vector<1x64xf32>
    %c0_35 = arith.constant 0 : index
    %c0_36 = arith.constant 0 : index
    %58 = vector.load %arg11[%c0_35, %c0_36] : memref<1x64xf32, #tpu.memory_space<vmem>>, vector<1x64xf32>
    %cst_37 = arith.constant dense<0.000000e+00> : vector<8xf32>
    %59 = vector.multi_reduction <add>, %56, %cst_37 [1] : vector<8x64xf32> to vector<8xf32>
    %60 = vector.shape_cast %59 : vector<8xf32> to vector<8x1xf32>
    %cst_38 = arith.constant 6.400000e+01 : f32
    %61 = vector.broadcast %cst_38 : f32 to vector<8x1xf32>
    %62 = arith.divf %60, %61 : vector<8x1xf32>
    %63 = vector.broadcast %62 : vector<8x1xf32> to vector<8x64xf32>
    %64 = arith.subf %56, %63 : vector<8x64xf32>
    %65 = arith.mulf %64, %64 : vector<8x64xf32>
    %cst_39 = arith.constant dense<0.000000e+00> : vector<8xf32>
    %66 = vector.multi_reduction <add>, %65, %cst_39 [1] : vector<8x64xf32> to vector<8xf32>
    %67 = vector.shape_cast %66 : vector<8xf32> to vector<8x1xf32>
    %cst_40 = arith.constant 6.400000e+01 : f32
    %68 = vector.broadcast %cst_40 : f32 to vector<8x1xf32>
    %69 = arith.divf %67, %68 : vector<8x1xf32>
    %cst_41 = arith.constant 9.99999974E-6 : f32
    %70 = vector.broadcast %cst_41 : f32 to vector<8x1xf32>
    %71 = arith.addf %69, %70 : vector<8x1xf32>
    %72 = math.rsqrt %71 : vector<8x1xf32>
    %73 = vector.broadcast %72 : vector<8x1xf32> to vector<8x64xf32>
    %74 = arith.mulf %64, %73 : vector<8x64xf32>
    %75 = vector.broadcast %57 : vector<1x64xf32> to vector<8x64xf32>
    %76 = arith.mulf %74, %75 : vector<8x64xf32>
    %77 = vector.broadcast %58 : vector<1x64xf32> to vector<8x64xf32>
    %78 = arith.addf %76, %77 : vector<8x64xf32>
    %cst_42 = arith.constant 0.000000e+00 : f32
    %79 = vector.broadcast %cst_42 : f32 to vector<8x64xf32>
    %80 = arith.maximumf %78, %79 : vector<8x64xf32>
    %c0_43 = arith.constant 0 : index
    %c0_44 = arith.constant 0 : index
    %81 = vector.load %arg12[%c0_43, %c0_44] : memref<64x128xf32, #tpu.memory_space<vmem>>, vector<64x128xf32>
    %cst_45 = arith.constant dense<0.000000e+00> : vector<8x128xf32>
    %82 = tpu.matmul %80, %81, %cst_45 {dimension_numbers = #tpu.dot_dimension_numbers<[1], [0], [0], [1], [0, 0, 1, 1], [], []>} : vector<8x64xf32>, vector<64x128xf32>, vector<8x128xf32> -> vector<8x128xf32>
    %c0_46 = arith.constant 0 : index
    %c0_47 = arith.constant 0 : index
    %83 = vector.load %arg13[%c0_46, %c0_47] : memref<1x128xf32, #tpu.memory_space<vmem>>, vector<1x128xf32>
    %84 = vector.broadcast %83 : vector<1x128xf32> to vector<8x128xf32>
    %85 = arith.addf %82, %84 : vector<8x128xf32>
    %c0_48 = arith.constant 0 : index
    %c0_49 = arith.constant 0 : index
    %86 = vector.load %arg16[%c0_48, %c0_49] : memref<8x128xf32, #tpu.memory_space<vmem>>, vector<8x128xf32>
    tpu.vector_store %arg16[%c0_48, %c0_49], %6 {strides = array<i32>} : memref<8x128xf32, #tpu.memory_space<vmem>>, vector<8x128xf32>,
    %c0_50 = arith.constant 0 : index
    %c0_51 = arith.constant 0 : index
    %87 = vector.load %arg17[%c0_50, %c0_51] : memref<8x256xf32, #tpu.memory_space<vmem>>, vector<8x128xf32>
    tpu.vector_store %arg17[%c0_50, %c0_51], %85 {strides = array<i32>} : memref<8x256xf32, #tpu.memory_space<vmem>>, vector<8x128xf32>,
    %c0_52 = arith.constant 0 : index
    %c128 = arith.constant 128 : index
    %88 = vector.load %arg17[%c0_52, %c128] : memref<8x256xf32, #tpu.memory_space<vmem>>, vector<8x128xf32>
    tpu.vector_store %arg17[%c0_52, %c128], %51 {strides = array<i32>} : memref<8x256xf32, #tpu.memory_space<vmem>>, vector<8x128xf32>,
    %c0_53 = arith.constant 0 : index
    %c0_54 = arith.constant 0 : index
    %89 = vector.load %arg18[%c0_53, %c0_54] : memref<8x128xf32, #tpu.memory_space<vmem>>, vector<8x128xf32>
    tpu.vector_store %arg18[%c0_53, %c0_54], %46 {strides = array<i32>} : memref<8x128xf32, #tpu.memory_space<vmem>>, vector<8x128xf32>,
    return
  }
  func.func @transform_0(%arg0: i32) -> (i32, i32) {
    %c0_i32 = arith.constant 0 : i32
    %c0_i32_0 = arith.constant 0 : i32
    return %arg0, %c0_i32 : i32, i32
  }
  func.func @transform_1(%arg0: i32) -> (i32, i32) {
    %c0_i32 = arith.constant 0 : i32
    %c0_i32_0 = arith.constant 0 : i32
    %c0_i32_1 = arith.constant 0 : i32
    return %c0_i32, %c0_i32_0 : i32, i32
  }
  func.func @transform_2(%arg0: i32) -> (i32, i32) {
    %c0_i32 = arith.constant 0 : i32
    %c0_i32_0 = arith.constant 0 : i32
    %c0_i32_1 = arith.constant 0 : i32
    return %c0_i32, %c0_i32_0 : i32, i32
  }
  func.func @transform_3(%arg0: i32) -> (i32, i32) {
    %c0_i32 = arith.constant 0 : i32
    %c0_i32_0 = arith.constant 0 : i32
    %c0_i32_1 = arith.constant 0 : i32
    return %c0_i32, %c0_i32_0 : i32, i32
  }
  func.func @transform_4(%arg0: i32) -> (i32, i32) {
    %c0_i32 = arith.constant 0 : i32
    %c0_i32_0 = arith.constant 0 : i32
    %c0_i32_1 = arith.constant 0 : i32
    return %c0_i32, %c0_i32_0 : i32, i32
  }
  func.func @transform_5(%arg0: i32) -> (i32, i32) {
    %c0_i32 = arith.constant 0 : i32
    %c0_i32_0 = arith.constant 0 : i32
    %c0_i32_1 = arith.constant 0 : i32
    return %c0_i32, %c0_i32_0 : i32, i32
  }
  func.func @transform_6(%arg0: i32) -> (i32, i32) {
    %c0_i32 = arith.constant 0 : i32
    %c0_i32_0 = arith.constant 0 : i32
    %c0_i32_1 = arith.constant 0 : i32
    return %c0_i32, %c0_i32_0 : i32, i32
  }
  func.func @transform_7(%arg0: i32) -> (i32, i32) {
    %c0_i32 = arith.constant 0 : i32
    %c0_i32_0 = arith.constant 0 : i32
    %c0_i32_1 = arith.constant 0 : i32
    return %c0_i32, %c0_i32_0 : i32, i32
  }
  func.func @transform_8(%arg0: i32) -> (i32, i32) {
    %c0_i32 = arith.constant 0 : i32
    %c0_i32_0 = arith.constant 0 : i32
    %c0_i32_1 = arith.constant 0 : i32
    return %c0_i32, %c0_i32_0 : i32, i32
  }
  func.func @transform_9(%arg0: i32) -> (i32, i32) {
    %c0_i32 = arith.constant 0 : i32
    %c0_i32_0 = arith.constant 0 : i32
    %c0_i32_1 = arith.constant 0 : i32
    return %c0_i32, %c0_i32_0 : i32, i32
  }
  func.func @transform_10(%arg0: i32) -> (i32, i32) {
    %c0_i32 = arith.constant 0 : i32
    %c0_i32_0 = arith.constant 0 : i32
    %c0_i32_1 = arith.constant 0 : i32
    return %c0_i32, %c0_i32_0 : i32, i32
  }
  func.func @transform_11(%arg0: i32) -> (i32, i32) {
    %c0_i32 = arith.constant 0 : i32
    %c0_i32_0 = arith.constant 0 : i32
    %c0_i32_1 = arith.constant 0 : i32
    return %c0_i32, %c0_i32_0 : i32, i32
  }
  func.func @transform_12(%arg0: i32) -> (i32, i32) {
    %c0_i32 = arith.constant 0 : i32
    %c0_i32_0 = arith.constant 0 : i32
    %c0_i32_1 = arith.constant 0 : i32
    return %c0_i32, %c0_i32_0 : i32, i32
  }
  func.func @transform_13(%arg0: i32) -> (i32, i32) {
    %c0_i32 = arith.constant 0 : i32
    %c0_i32_0 = arith.constant 0 : i32
    %c0_i32_1 = arith.constant 0 : i32
    return %c0_i32, %c0_i32_0 : i32, i32
  }
  func.func @transform_14(%arg0: i32) -> (i32, i32) {
    %c0_i32 = arith.constant 0 : i32
    %c0_i32_0 = arith.constant 0 : i32
    %c0_i32_1 = arith.constant 0 : i32
    return %c0_i32, %c0_i32_0 : i32, i32
  }
  func.func @transform_15(%arg0: i32) -> (i32, i32) {
    %c0_i32 = arith.constant 0 : i32
    %c0_i32_0 = arith.constant 0 : i32
    return %arg0, %c0_i32 : i32, i32
  }
  func.func @transform_16(%arg0: i32) -> (i32, i32) {
    %c0_i32 = arith.constant 0 : i32
    %c0_i32_0 = arith.constant 0 : i32
    return %arg0, %c0_i32 : i32, i32
  }
  func.func @transform_17(%arg0: i32) -> (i32, i32) {
    %c0_i32 = arith.constant 0 : i32
    %c0_i32_0 = arith.constant 0 : i32
    return %arg0, %c0_i32 : i32, i32
  }
}

module attributes {stable_mosaic.version = 11 : i64} {
  func.func @kernel(%arg0: i32, %arg1: memref<8x32xf32, #tpu.memory_space<vmem>>, %arg2: memref<32x192xf32, #tpu.memory_space<vmem>>, %arg3: memref<1x192xf32, #tpu.memory_space<vmem>>, %arg4: memref<1x64xf32, #tpu.memory_space<vmem>>, %arg5: memref<1x64xf32, #tpu.memory_space<vmem>>, %arg6: memref<64x128xf32, #tpu.memory_space<vmem>>, %arg7: memref<1x128xf32, #tpu.memory_space<vmem>>, %arg8: memref<128x64xf32, #tpu.memory_space<vmem>>, %arg9: memref<1x64xf32, #tpu.memory_space<vmem>>, %arg10: memref<1x64xf32, #tpu.memory_space<vmem>>, %arg11: memref<1x64xf32, #tpu.memory_space<vmem>>, %arg12: memref<64x128xf32, #tpu.memory_space<vmem>>, %arg13: memref<1x128xf32, #tpu.memory_space<vmem>>, %arg14: memref<128x128xf32, #tpu.memory_space<vmem>>, %arg15: memref<128x128xf32, #tpu.memory_space<vmem>>, %arg16: memref<8x128xf32, #tpu.memory_space<vmem>>, %arg17: memref<8x256xf32, #tpu.memory_space<vmem>>, %arg18: memref<8x128xf32, #tpu.memory_space<vmem>>) attributes {dimension_semantics = [#tpu.dimension_semantics<parallel>], iteration_bounds = array<i64: 1>, scalar_prefetch = 0 : i64, scratch_operands = 0 : i64, tpu.core_type = #tpu.core_type<tc>, window_params = [{transform_indices = @transform_0, window_bounds = array<i64: 8, 32>}, {pipeline_mode = #tpu.pipeline_mode<synchronous>, transform_indices = @transform_1, window_bounds = array<i64: 32, 192>}, {pipeline_mode = #tpu.pipeline_mode<synchronous>, transform_indices = @transform_2, window_bounds = array<i64: 1, 192>}, {pipeline_mode = #tpu.pipeline_mode<synchronous>, transform_indices = @transform_3, window_bounds = array<i64: 1, 64>}, {pipeline_mode = #tpu.pipeline_mode<synchronous>, transform_indices = @transform_4, window_bounds = array<i64: 1, 64>}, {pipeline_mode = #tpu.pipeline_mode<synchronous>, transform_indices = @transform_5, window_bounds = array<i64: 64, 128>}, {pipeline_mode = #tpu.pipeline_mode<synchronous>, transform_indices = @transform_6, window_bounds = array<i64: 1, 128>}, {pipeline_mode = #tpu.pipeline_mode<synchronous>, transform_indices = @transform_7, window_bounds = array<i64: 128, 64>}, {pipeline_mode = #tpu.pipeline_mode<synchronous>, transform_indices = @transform_8, window_bounds = array<i64: 1, 64>}, {pipeline_mode = #tpu.pipeline_mode<synchronous>, transform_indices = @transform_9, window_bounds = array<i64: 1, 64>}, {pipeline_mode = #tpu.pipeline_mode<synchronous>, transform_indices = @transform_10, window_bounds = array<i64: 1, 64>}, {pipeline_mode = #tpu.pipeline_mode<synchronous>, transform_indices = @transform_11, window_bounds = array<i64: 64, 128>}, {pipeline_mode = #tpu.pipeline_mode<synchronous>, transform_indices = @transform_12, window_bounds = array<i64: 1, 128>}, {pipeline_mode = #tpu.pipeline_mode<synchronous>, transform_indices = @transform_13, window_bounds = array<i64: 128, 128>}, {pipeline_mode = #tpu.pipeline_mode<synchronous>, transform_indices = @transform_14, window_bounds = array<i64: 128, 128>}, {transform_indices = @transform_15, window_bounds = array<i64: 8, 128>}, {transform_indices = @transform_16, window_bounds = array<i64: 8, 256>}, {transform_indices = @transform_17, window_bounds = array<i64: 8, 128>}]} {
    %c0 = arith.constant 0 : index
    %c0_0 = arith.constant 0 : index
    %0 = vector.load %arg1[%c0, %c0_0] : memref<8x32xf32, #tpu.memory_space<vmem>>, vector<8x32xf32>
    %c0_1 = arith.constant 0 : index
    %c0_2 = arith.constant 0 : index
    %1 = vector.load %arg2[%c0_1, %c0_2] : memref<32x192xf32, #tpu.memory_space<vmem>>, vector<32x192xf32>
    %cst = arith.constant dense<0.000000e+00> : vector<8x192xf32>
    %2 = tpu.matmul %0, %1, %cst {dimension_numbers = #tpu.dot_dimension_numbers<[1], [0], [0], [1], [0, 0, 1, 1], [], []>} : vector<8x32xf32>, vector<32x192xf32>, vector<8x192xf32> -> vector<8x192xf32>
    %c0_3 = arith.constant 0 : index
    %c0_4 = arith.constant 0 : index
    %3 = vector.load %arg3[%c0_3, %c0_4] : memref<1x192xf32, #tpu.memory_space<vmem>>, vector<1x192xf32>
    %4 = vector.broadcast %3 : vector<1x192xf32> to vector<8x192xf32>
    %5 = arith.addf %2, %4 : vector<8x192xf32>
    %6 = vector.extract_strided_slice %5 {offsets = [0, 0], sizes = [8, 128], strides = [1, 1]} : vector<8x192xf32> to vector<8x128xf32>
    %7 = vector.extract_strided_slice %5 {offsets = [0, 128], sizes = [8, 64], strides = [1, 1]} : vector<8x192xf32> to vector<8x64xf32>
    %c0_5 = arith.constant 0 : index
    %c0_6 = arith.constant 0 : index
    %8 = vector.load %arg4[%c0_5, %c0_6] : memref<1x64xf32, #tpu.memory_space<vmem>>, vector<1x64xf32>
    %c0_7 = arith.constant 0 : index
    %c0_8 = arith.constant 0 : index
    %9 = vector.load %arg5[%c0_7, %c0_8] : memref<1x64xf32, #tpu.memory_space<vmem>>, vector<1x64xf32>
    %cst_9 = arith.constant dense<0.000000e+00> : vector<8xf32>
    %10 = vector.multi_reduction <add>, %7, %cst_9 [1] : vector<8x64xf32> to vector<8xf32>
    %11 = vector.shape_cast %10 : vector<8xf32> to vector<8x1xf32>
    %cst_10 = arith.constant 6.400000e+01 : f32
    %12 = vector.broadcast %cst_10 : f32 to vector<8x1xf32>
    %13 = arith.divf %11, %12 : vector<8x1xf32>
    %14 = vector.broadcast %13 : vector<8x1xf32> to vector<8x64xf32>
    %15 = arith.subf %7, %14 : vector<8x64xf32>
    %16 = arith.mulf %15, %15 : vector<8x64xf32>
    %cst_11 = arith.constant dense<0.000000e+00> : vector<8xf32>
    %17 = vector.multi_reduction <add>, %16, %cst_11 [1] : vector<8x64xf32> to vector<8xf32>
    %18 = vector.shape_cast %17 : vector<8xf32> to vector<8x1xf32>
    %cst_12 = arith.constant 6.400000e+01 : f32
    %19 = vector.broadcast %cst_12 : f32 to vector<8x1xf32>
    %20 = arith.divf %18, %19 : vector<8x1xf32>
    %cst_13 = arith.constant 9.99999974E-6 : f32
    %21 = vector.broadcast %cst_13 : f32 to vector<8x1xf32>
    %22 = arith.addf %20, %21 : vector<8x1xf32>
    %23 = math.rsqrt %22 : vector<8x1xf32>
    %24 = vector.broadcast %23 : vector<8x1xf32> to vector<8x64xf32>
    %25 = arith.mulf %15, %24 : vector<8x64xf32>
    %26 = vector.broadcast %8 : vector<1x64xf32> to vector<8x64xf32>
    %27 = arith.mulf %25, %26 : vector<8x64xf32>
    %28 = vector.broadcast %9 : vector<1x64xf32> to vector<8x64xf32>
    %29 = arith.addf %27, %28 : vector<8x64xf32>
    %cst_14 = arith.constant 0.000000e+00 : f32
    %30 = vector.broadcast %cst_14 : f32 to vector<8x64xf32>
    %31 = arith.maximumf %29, %30 : vector<8x64xf32>
    %c0_15 = arith.constant 0 : index
    %c0_16 = arith.constant 0 : index
    %32 = vector.load %arg6[%c0_15, %c0_16] : memref<64x128xf32, #tpu.memory_space<vmem>>, vector<64x128xf32>
    %cst_17 = arith.constant dense<0.000000e+00> : vector<8x128xf32>
    %33 = tpu.matmul %31, %32, %cst_17 {dimension_numbers = #tpu.dot_dimension_numbers<[1], [0], [0], [1], [0, 0, 1, 1], [], []>} : vector<8x64xf32>, vector<64x128xf32>, vector<8x128xf32> -> vector<8x128xf32>
    %c0_18 = arith.constant 0 : index
    %c0_19 = arith.constant 0 : index
    %34 = vector.load %arg7[%c0_18, %c0_19] : memref<1x128xf32, #tpu.memory_space<vmem>>, vector<1x128xf32>
    %35 = vector.broadcast %34 : vector<1x128xf32> to vector<8x128xf32>
    %36 = arith.addf %33, %35 : vector<8x128xf32>
    %cst_20 = arith.constant dense<0xFF800000> : vector<8xf32>
    %37 = vector.multi_reduction <maximumf>, %36, %cst_20 [1] : vector<8x128xf32> to vector<8xf32>
    %38 = vector.shape_cast %37 : vector<8xf32> to vector<8x1xf32>
    %39 = vector.broadcast %38 : vector<8x1xf32> to vector<8x128xf32>
    %40 = arith.subf %36, %39 : vector<8x128xf32>
    %41 = math.exp %40 : vector<8x128xf32>
    %cst_21 = arith.constant dense<0.000000e+00> : vector<8xf32>
    %42 = vector.multi_reduction <add>, %41, %cst_21 [1] : vector<8x128xf32> to vector<8xf32>
    %43 = vector.shape_cast %42 : vector<8xf32> to vector<8x1xf32>
    %44 = tpu.reciprocal %43 : vector<8x1xf32> -> vector<8x1xf32>
    %45 = vector.broadcast %44 : vector<8x1xf32> to vector<8x128xf32>
    %46 = arith.mulf %41, %45 : vector<8x128xf32>
    %c0_22 = arith.constant 0 : index
    %c0_23 = arith.constant 0 : index
    %47 = vector.load %arg14[%c0_22, %c0_23] : memref<128x128xf32, #tpu.memory_space<vmem>>, vector<128x128xf32>
    %cst_24 = arith.constant dense<0.000000e+00> : vector<8x128xf32>
    %48 = tpu.matmul %46, %47, %cst_24 {dimension_numbers = #tpu.dot_dimension_numbers<[1], [0], [0], [1], [0, 0, 1, 1], [], []>} : vector<8x128xf32>, vector<128x128xf32>, vector<8x128xf32> -> vector<8x128xf32>
    %49 = arith.mulf %48, %6 : vector<8x128xf32>
    %c0_25 = arith.constant 0 : index
    %c0_26 = arith.constant 0 : index
    %50 = vector.load %arg15[%c0_25, %c0_26] : memref<128x128xf32, #tpu.memory_space<vmem>>, vector<128x128xf32>
    %cst_27 = arith.constant dense<0.000000e+00> : vector<8x128xf32>
    %51 = tpu.matmul %49, %50, %cst_27 {dimension_numbers = #tpu.dot_dimension_numbers<[1], [0], [0], [1], [0, 0, 1, 1], [], []>} : vector<8x128xf32>, vector<128x128xf32>, vector<8x128xf32> -> vector<8x128xf32>
    %c0_28 = arith.constant 0 : index
    %c0_29 = arith.constant 0 : index
    %52 = vector.load %arg8[%c0_28, %c0_29] : memref<128x64xf32, #tpu.memory_space<vmem>>, vector<128x64xf32>
    %cst_30 = arith.constant dense<0.000000e+00> : vector<8x64xf32>
    %53 = tpu.matmul %6, %52, %cst_30 {dimension_numbers = #tpu.dot_dimension_numbers<[1], [0], [0], [1], [0, 0, 1, 1], [], []>} : vector<8x128xf32>, vector<128x64xf32>, vector<8x64xf32> -> vector<8x64xf32>
    %c0_31 = arith.constant 0 : index
    %c0_32 = arith.constant 0 : index
    %54 = vector.load %arg9[%c0_31, %c0_32] : memref<1x64xf32, #tpu.memory_space<vmem>>, vector<1x64xf32>
    %55 = vector.broadcast %54 : vector<1x64xf32> to vector<8x64xf32>
    %56 = arith.addf %53, %55 : vector<8x64xf32>
    %c0_33 = arith.constant 0 : index
    %c0_34 = arith.constant 0 : index
    %57 = vector.load %arg10[%c0_33, %c0_34] : memref<1x64xf32, #tpu.memory_space<vmem>>, vector<1x64xf32>
    %c0_35 = arith.constant 0 : index
    %c0_36 = arith.constant 0 : index
    %58 = vector.load %arg11[%c0_35, %c0_36] : memref<1x64xf32, #tpu.memory_space<vmem>>, vector<1x64xf32>
    %cst_37 = arith.constant dense<0.000000e+00> : vector<8xf32>
    %59 = vector.multi_reduction <add>, %56, %cst_37 [1] : vector<8x64xf32> to vector<8xf32>
    %60 = vector.shape_cast %59 : vector<8xf32> to vector<8x1xf32>
    %cst_38 = arith.constant 6.400000e+01 : f32
    %61 = vector.broadcast %cst_38 : f32 to vector<8x1xf32>
    %62 = arith.divf %60, %61 : vector<8x1xf32>
    %63 = vector.broadcast %62 : vector<8x1xf32> to vector<8x64xf32>
    %64 = arith.subf %56, %63 : vector<8x64xf32>
    %65 = arith.mulf %64, %64 : vector<8x64xf32>
    %cst_39 = arith.constant dense<0.000000e+00> : vector<8xf32>
    %66 = vector.multi_reduction <add>, %65, %cst_39 [1] : vector<8x64xf32> to vector<8xf32>
    %67 = vector.shape_cast %66 : vector<8xf32> to vector<8x1xf32>
    %cst_40 = arith.constant 6.400000e+01 : f32
    %68 = vector.broadcast %cst_40 : f32 to vector<8x1xf32>
    %69 = arith.divf %67, %68 : vector<8x1xf32>
    %cst_41 = arith.constant 9.99999974E-6 : f32
    %70 = vector.broadcast %cst_41 : f32 to vector<8x1xf32>
    %71 = arith.addf %69, %70 : vector<8x1xf32>
    %72 = math.rsqrt %71 : vector<8x1xf32>
    %73 = vector.broadcast %72 : vector<8x1xf32> to vector<8x64xf32>
    %74 = arith.mulf %64, %73 : vector<8x64xf32>
    %75 = vector.broadcast %57 : vector<1x64xf32> to vector<8x64xf32>
    %76 = arith.mulf %74, %75 : vector<8x64xf32>
    %77 = vector.broadcast %58 : vector<1x64xf32> to vector<8x64xf32>
    %78 = arith.addf %76, %77 : vector<8x64xf32>
    %cst_42 = arith.constant 0.000000e+00 : f32
    %79 = vector.broadcast %cst_42 : f32 to vector<8x64xf32>
    %80 = arith.maximumf %78, %79 : vector<8x64xf32>
    %c0_43 = arith.constant 0 : index
    %c0_44 = arith.constant 0 : index
    %81 = vector.load %arg12[%c0_43, %c0_44] : memref<64x128xf32, #tpu.memory_space<vmem>>, vector<64x128xf32>
    %cst_45 = arith.constant dense<0.000000e+00> : vector<8x128xf32>
    %82 = tpu.matmul %80, %81, %cst_45 {dimension_numbers = #tpu.dot_dimension_numbers<[1], [0], [0], [1], [0, 0, 1, 1], [], []>} : vector<8x64xf32>, vector<64x128xf32>, vector<8x128xf32> -> vector<8x128xf32>
    %c0_46 = arith.constant 0 : index
    %c0_47 = arith.constant 0 : index
    %83 = vector.load %arg13[%c0_46, %c0_47] : memref<1x128xf32, #tpu.memory_space<vmem>>, vector<1x128xf32>
    %84 = vector.broadcast %83 : vector<1x128xf32> to vector<8x128xf32>
    %85 = arith.addf %82, %84 : vector<8x128xf32>
    %c0_48 = arith.constant 0 : index
    %c0_49 = arith.constant 0 : index
    %86 = vector.load %arg16[%c0_48, %c0_49] : memref<8x128xf32, #tpu.memory_space<vmem>>, vector<8x128xf32>
    tpu.vector_store %arg16[%c0_48, %c0_49], %6 {strides = array<i32>} : memref<8x128xf32, #tpu.memory_space<vmem>>, vector<8x128xf32>,
    %c0_50 = arith.constant 0 : index
    %c0_51 = arith.constant 0 : index
    %87 = vector.load %arg17[%c0_50, %c0_51] : memref<8x256xf32, #tpu.memory_space<vmem>>, vector<8x128xf32>
    tpu.vector_store %arg17[%c0_50, %c0_51], %85 {strides = array<i32>} : memref<8x256xf32, #tpu.memory_space<vmem>>, vector<8x128xf32>,
    %c0_52 = arith.constant 0 : index
    %c128 = arith.constant 128 : index
    %88 = vector.load %arg17[%c0_52, %c128] : memref<8x256xf32, #tpu.memory_space<vmem>>, vector<8x128xf32>
    tpu.vector_store %arg17[%c0_52, %c128], %51 {strides = array<i32>} : memref<8x256xf32, #tpu.memory_space<vmem>>, vector<8x128xf32>,
    %c0_53 = arith.constant 0 : index
    %c0_54 = arith.constant 0 : index
    %89 = vector.load %arg18[%c0_53, %c0_54] : memref<8x128xf32, #tpu.memory_space<vmem>>, vector<8x128xf32>
    tpu.vector_store %arg18[%c0_53, %c0_54], %46 {strides = array<i32>} : memref<8x128xf32, #tpu.memory_space<vmem>>, vector<8x128xf32>,
    return
  }
  func.func @transform_0(%arg0: i32) -> (i32, i32) {
    %c0_i32 = arith.constant 0 : i32
    %c0_i32_0 = arith.constant 0 : i32
    return %arg0, %c0_i32 : i32, i32
  }
  func.func @transform_1(%arg0: i32) -> (i32, i32) {
    %c0_i32 = arith.constant 0 : i32
    %c0_i32_0 = arith.constant 0 : i32
    %c0_i32_1 = arith.constant 0 : i32
    return %c0_i32, %c0_i32_0 : i32, i32
  }
  func.func @transform_2(%arg0: i32) -> (i32, i32) {
    %c0_i32 = arith.constant 0 : i32
    %c0_i32_0 = arith.constant 0 : i32
    %c0_i32_1 = arith.constant 0 : i32
    return %c0_i32, %c0_i32_0 : i32, i32
  }
  func.func @transform_3(%arg0: i32) -> (i32, i32) {
    %c0_i32 = arith.constant 0 : i32
    %c0_i32_0 = arith.constant 0 : i32
    %c0_i32_1 = arith.constant 0 : i32
    return %c0_i32, %c0_i32_0 : i32, i32
  }
  func.func @transform_4(%arg0: i32) -> (i32, i32) {
    %c0_i32 = arith.constant 0 : i32
    %c0_i32_0 = arith.constant 0 : i32
    %c0_i32_1 = arith.constant 0 : i32
    return %c0_i32, %c0_i32_0 : i32, i32
  }
  func.func @transform_5(%arg0: i32) -> (i32, i32) {
    %c0_i32 = arith.constant 0 : i32
    %c0_i32_0 = arith.constant 0 : i32
    %c0_i32_1 = arith.constant 0 : i32
    return %c0_i32, %c0_i32_0 : i32, i32
  }
  func.func @transform_6(%arg0: i32) -> (i32, i32) {
    %c0_i32 = arith.constant 0 : i32
    %c0_i32_0 = arith.constant 0 : i32
    %c0_i32_1 = arith.constant 0 : i32
    return %c0_i32, %c0_i32_0 : i32, i32
  }
  func.func @transform_7(%arg0: i32) -> (i32, i32) {
    %c0_i32 = arith.constant 0 : i32
    %c0_i32_0 = arith.constant 0 : i32
    %c0_i32_1 = arith.constant 0 : i32
    return %c0_i32, %c0_i32_0 : i32, i32
  }
  func.func @transform_8(%arg0: i32) -> (i32, i32) {
    %c0_i32 = arith.constant 0 : i32
    %c0_i32_0 = arith.constant 0 : i32
    %c0_i32_1 = arith.constant 0 : i32
    return %c0_i32, %c0_i32_0 : i32, i32
  }
  func.func @transform_9(%arg0: i32) -> (i32, i32) {
    %c0_i32 = arith.constant 0 : i32
    %c0_i32_0 = arith.constant 0 : i32
    %c0_i32_1 = arith.constant 0 : i32
    return %c0_i32, %c0_i32_0 : i32, i32
  }
  func.func @transform_10(%arg0: i32) -> (i32, i32) {
    %c0_i32 = arith.constant 0 : i32
    %c0_i32_0 = arith.constant 0 : i32
    %c0_i32_1 = arith.constant 0 : i32
    return %c0_i32, %c0_i32_0 : i32, i32
  }
  func.func @transform_11(%arg0: i32) -> (i32, i32) {
    %c0_i32 = arith.constant 0 : i32
    %c0_i32_0 = arith.constant 0 : i32
    %c0_i32_1 = arith.constant 0 : i32
    return %c0_i32, %c0_i32_0 : i32, i32
  }
  func.func @transform_12(%arg0: i32) -> (i32, i32) {
    %c0_i32 = arith.constant 0 : i32
    %c0_i32_0 = arith.constant 0 : i32
    %c0_i32_1 = arith.constant 0 : i32
    return %c0_i32, %c0_i32_0 : i32, i32
  }
  func.func @transform_13(%arg0: i32) -> (i32, i32) {
    %c0_i32 = arith.constant 0 : i32
    %c0_i32_0 = arith.constant 0 : i32
    %c0_i32_1 = arith.constant 0 : i32
    return %c0_i32, %c0_i32_0 : i32, i32
  }
  func.func @transform_14(%arg0: i32) -> (i32, i32) {
    %c0_i32 = arith.constant 0 : i32
    %c0_i32_0 = arith.constant 0 : i32
    %c0_i32_1 = arith.constant 0 : i32
    return %c0_i32, %c0_i32_0 : i32, i32
  }
  func.func @transform_15(%arg0: i32) -> (i32, i32) {
    %c0_i32 = arith.constant 0 : i32
    %c0_i32_0 = arith.constant 0 : i32
    return %arg0, %c0_i32 : i32, i32
  }
  func.func @transform_16(%arg0: i32) -> (i32, i32) {
    %c0_i32 = arith.constant 0 : i32
    %c0_i32_0 = arith.constant 0 : i32
    return %arg0, %c0_i32 : i32, i32
  }
  func.func @transform_17(%arg0: i32) -> (i32, i32) {
    %c0_i32 = arith.constant 0 : i32
    %c0_i32_0 = arith.constant 0 : i32
    return %arg0, %c0_i32 : i32, i32
  }
}

</mosaic_0001>

<bundles_post_ra>
// kernel: enhanced_reasoning_forward.1
= control target key start
LH: loop header
LB: loop body
LE: loop exit
PB: predicated region body
PF: predicated region fallthrough
CT: control target
= control target key end

     0   :  { %s1496_s0 = inlined_call_operand.vmem [shape: f32[8,32], index: 0, kind: input, shape index: {}]   ;;  %s1497_s1 = inlined_call_operand.vmem [shape: f32[32,192], index: 1, kind: input, shape index: {}]   ;;  %s1498_s2 = inlined_call_operand.vmem [shape: f32[1,192], index: 2, kind: input, shape index: {}]   ;;  %s1499_s3 = inlined_call_operand.vmem [shape: f32[1,64], index: 3, kind: input, shape index: {}]   ;;  %s1500_s4 = inlined_call_operand.vmem [shape: f32[1,64], index: 4, kind: input, shape index: {}]   ;;  %s1501_s5 = inlined_call_operand.hbm [shape: f32[64,128], index: 5, kind: input, shape index: {}]   ;;  %s1502_s6 = inlined_call_operand.vmem [shape: f32[1,128], index: 6, kind: input, shape index: {}]   ;;  %s1503_s7 = inlined_call_operand.vmem [shape: f32[128,64], index: 7, kind: input, shape index: {}]   ;;  %s1504_s8 = inlined_call_operand.vmem [shape: f32[1,64], index: 8, kind: input, shape index: {}]   ;;  %s1505_s9 = inlined_call_operand.vmem [shape: f32[1,64], index: 9, kind: input, shape index: {}]   ;;  %s1506_s10 = inlined_call_operand.vmem [shape: f32[1,64], index: 10, kind: input, shape index: {}]   ;;  %s1507_s11 = inlined_call_operand.hbm [shape: f32[64,128], index: 11, kind: input, shape index: {}]   ;;  %s1508_s12 = inlined_call_operand.vmem [shape: f32[1,128], index: 12, kind: input, shape index: {}]   ;;  %s1509_s13 = inlined_call_operand.vmem [shape: f32[128,128], index: 13, kind: input, shape index: {}]   ;;  %s1510_s14 = inlined_call_operand.hbm [shape: f32[128,128], index: 14, kind: input, shape index: {}]   ;;  %s1511_s15 = inlined_call_operand.vmem [shape: f32[8,128], index: 15, kind: output, shape index: {0}]   ;;  %s1512_s16 = inlined_call_operand.vmem [shape: f32[8,256], index: 16, kind: output, shape index: {1}]   ;;  %s1513_s17 = inlined_call_operand.vmem [shape: f32[8,128], index: 17, kind: output, shape index: {2}]  }
   0x1   :  { %1515 = sst [smem:[#allocation9_spill]] %s1496_s0 }
   0x2   :  { %1516 = sst [smem:[#allocation10_spill]] %s1497_s1 }
   0x3   :  { %23 = vsyncpa [#allocation3], 0 }
   0x4   :  { %24 = vsyncpa [#allocation5], 0  ;;  %s1133_s24 = smov [#allocation4]   ;;  %s1134_s26 = smov [#allocation2]  }
   0x5   :  { %s62_s25 = sshll.u32 %s1133_s24, 4  ;;  %s40_s27 = sshll.u32 %s1134_s26, 4  ;;  %s63_s25 = int_to_ptr.vmem [resolvable:$true] %s62_s25  ;;  %s1231_s27 = int_to_ptr.vmem [resolvable:$true] %s40_s27 }
   0x6   :  { %s1063_s0 = scalar_lea.hbm %s1507_s11, 1024 }
   0x7   :  { %p1064_p0 = scmp.ne.s32.totalorder %s1507_s11, %s1063_s0  ;;  %p1067_p1 = scmp.lt.u32.totalorder %s1063_s0, %s1507_s11 }
   0x9   :  { %p1069_p2 = pnand %p1067_p1, %p1064_p0 }
   0xb   :  { %1072 = shalt.err (!%p1069_p2)
}
   0xc   :  { %s1073_s20 = scalar_lea.vmem %s63_s25, 1024  ;;  %p1078_p4 = scmp.lt.s32.totalorder %s63_s25, %s63_s25 }
   0xd   :  { %p1074_p3 = scmp.ne.s32.totalorder %s63_s25, %s1073_s20  ;;  %p1079_p5 = scmp.lt.s32.totalorder %s1073_s20, %s1073_s20 }
   0xf   :  { %p1080_p6 = por %p1079_p5, %p1078_p4 }
  0x11   :  { %p1081_p7 = pnand %p1080_p6, %p1074_p3 }
  0x13   :  { %1084 = shalt.err (!%p1081_p7)
}
  0x14   :  { %s1135_s21 = smov 128   ;;  %s1136_s22 = smov 8  }
  0x15   :  { %68 = dma.hbm_to_vmem [thread:$0]  %s1507_s11, 1024, %s63_s25, [#allocation5], %s1135_s21, %s1135_s21, %s1136_s22  }
  0x16   :  { %s1085_s29 = scalar_lea.hbm %s1501_s5, 1024 }
  0x17   :  { %p1086_p8 = scmp.ne.s32.totalorder %s1501_s5, %s1085_s29  ;;  %p1089_p9 = scmp.lt.u32.totalorder %s1085_s29, %s1501_s5 }
  0x19   :  { %p1091_p10 = pnand %p1089_p9, %p1086_p8 }
  0x1b   :  { %1094 = shalt.err (!%p1091_p10)
}
  0x1c   :  { %s1095_s1 = scalar_lea.vmem %s1231_s27, 1024  ;;  %p1100_p12 = scmp.lt.s32.totalorder %s1231_s27, %s1231_s27 }
  0x1d   :  { %p1096_p11 = scmp.ne.s32.totalorder %s1231_s27, %s1095_s1  ;;  %p1101_p13 = scmp.lt.s32.totalorder %s1095_s1, %s1095_s1 }
  0x1f   :  { %p1102_p0 = por %p1101_p13, %p1100_p12 }
  0x21   :  { %p1103_p1 = pnand %p1102_p0, %p1096_p11 }
  0x23   :  { %1106 = shalt.err (!%p1103_p1)
}
  0x24   :  { %46 = dma.hbm_to_vmem [thread:$0]  %s1501_s5, 1024, %s1231_s27, [#allocation3], %s1135_s21, %s1135_s21, %s1136_s22  }
  0x25   :  { %s1137_s20 = smov [#allocation6]   ;;  %s1107_s28 = scalar_lea.hbm %s1510_s14, 2048 }
  0x26   :  { %s78_s23 = sshll.u32 %s1137_s20, 4  ;;  %p1108_p2 = scmp.ne.s32.totalorder %s1510_s14, %s1107_s28  ;;  %s79_s23 = int_to_ptr.vmem [resolvable:$true] %s78_s23 }
  0x27   :  { %p1111_p3 = scmp.lt.u32.totalorder %s1107_s28, %s1510_s14 }
  0x29   :  { %p1113_p4 = pnand %p1111_p3, %p1108_p2 }
  0x2b   :  { %1116 = shalt.err (!%p1113_p4)
}
  0x2c   :  { %s1117_s19 = scalar_lea.vmem %s79_s23, 2048  ;;  %p1122_p6 = scmp.lt.s32.totalorder %s79_s23, %s79_s23 }
  0x2d   :  { %p1118_p5 = scmp.ne.s32.totalorder %s79_s23, %s1117_s19  ;;  %p1123_p7 = scmp.lt.s32.totalorder %s1117_s19, %s1117_s19 }
  0x2f   :  { %p1124_p8 = por %p1123_p7, %p1122_p6 }
  0x31   :  { %p1125_p9 = pnand %p1124_p8, %p1118_p5 }
  0x33   :  { %1128 = shalt.err (!%p1125_p9)
}
  0x34   :  { %84 = dma.hbm_to_vmem [thread:$0]  %s1510_s14, 2048, %s79_s23, [#allocation5], %s1135_s21, %s1135_s21, %s1136_s22  }
  0x35   :  { %1129 = dma.done.wait [#allocation3], 1024  }
  0x36   :  { %1130 = vsyncadd [#allocation3], 4294966272 }
  0x37   :  { %1131 = dma.done.wait [#allocation5], 3072  }
  0x38   :  { %1132 = vsyncadd [#allocation5], 4294964224  ;;  %v1138_v0 = vmov 0.0   ;;  %s1517_s25 = sld [smem:[#allocation10_spill]]  ;;  %s1518_s11 = sld [smem:[#allocation9_spill]]  ;;  %vm115_vm0 = vcmask 261120   ;;  %v105_v14 = vlaneseq }
  0x39   :  { %183 = vmatprep.mubr.f32.mxu0 %v1138_v0  ;;  %v103_v17 = vld [vmem:[%s1498_s2] sm:$0x3]  ;;  %vm192_vm1 = vcmask 523264   ;;  %v223_v32 = vld [vmem:[#allocation2 + $0x8] sm:$0xff]  ;;  %v224_v33 = vld [vmem:[#allocation2 + $0x10] sm:$0xff]  ;;  %v1139_v34 = vmov 0.0|0.0  }
  0x3a   :  { %v106_v15 = vshrl.u32 %v105_v14, 7  ;;  %v222_v31 = vld [vmem:[#allocation2] sm:$0xff]  ;;  %951 = vmatprep.subr.bf16.mxu1 %v1139_v34  ;;  %v225_v36 = vld [vmem:[#allocation2 + $0x18] sm:$0xff]  ;;  %vm1140_vm2 = vmmov 0   ;;  %v227_v39 = vld [vmem:[#allocation2 + $0x28] sm:$0xff] }
  0x3b   :  { %v952_v35 = vpack.c.bf16 %v223_v32, %v222_v31  ;;  %816 = vmatprep.mubr.msk.f32.mxu1 %vm1140_vm2, %v1138_v0  ;;  %v955_v37 = vpack.c.bf16 %v225_v36, %v224_v33  ;;  %v226_v38 = vld [vmem:[#allocation2 + $0x20] sm:$0xff]  ;;  %v228_v41 = vld [vmem:[#allocation2 + $0x30] sm:$0xff]  ;;  %v229_v42 = vld [vmem:[#allocation2 + $0x38] sm:$0xff] }
  0x3c   :  { %v107_v16 = vsub.s32 0, %v106_v15  ;;  %v111_v18 = vsub.s32 1, %v106_v15  ;;  %v958_v40 = vpack.c.bf16 %v227_v39, %v226_v38  ;;  %v961_v43 = vpack.c.bf16 %v229_v42, %v228_v41  ;;  %v722_v48 = vld [vmem:[%s1499_s3] ss:$0 sm:$0xff]  ;;  %v320_v59 = vld [vmem:[%s1509_s13 + $0x8] sm:$0xff]  ;;  %v321_v60 = vld [vmem:[%s1509_s13 + $0x10] sm:$0xff] }
  0x3d   :  { %953 = vmatpush3.bf16.msra.mxu1 %v952_v35  ;;  %v723_v50 = vld [vmem:[%s1500_s4] ss:$0 sm:$0xff]  ;;  %v322_v62 = vld [vmem:[%s1509_s13 + $0x18] sm:$0xff]  ;;  %v329_v14 = vld [vmem:[%s1509_s13 + $0x50] sm:$0xff] }
  0x3e   :  { %v96_v1 = vld [vmem:[%s1517_s25 + $0x8] sm:$0xff]  ;;  %v98_v2 = vld [vmem:[%s1517_s25 + $0x18] sm:$0xff]  ;;  %v95_v3 = vld [vmem:[%s1517_s25] sm:$0xff]  ;;  %v108_v19 = vrot.slane %v103_v17, %v107_v16  ;;  %v112_v20 = vrot.slane %v103_v17, %v111_v18  ;;  %954 = vmatprep.subr.bf16.mxu1 %v1139_v34  ;;  %v967_v63 = vpack.c.bf16 %v322_v62, %v321_v60 }
  0x3f   :  { %v943_v4 = vpack.c.bf16 %v98_v2, %v96_v1  ;;  %v97_v5 = vld [vmem:[%s1517_s25 + $0x10] sm:$0xff]  ;;  %v100_v6 = vld [vmem:[%s1517_s25 + $0x28] sm:$0xff]  ;;  %v102_v7 = vld [vmem:[%s1517_s25 + $0x38] sm:$0xff] }
  0x40   :  { %v945_v8 = vpack.c.bf16 %v97_v5, %v95_v3  ;;  %v947_v9 = vpack.c.bf16 %v102_v7, %v100_v6  ;;  %v99_v10 = vld [vmem:[%s1517_s25 + $0x20] sm:$0xff]  ;;  %v101_v11 = vld [vmem:[%s1517_s25 + $0x30] sm:$0xff]  ;;  %v324_v2 = vld [vmem:[%s1509_s13 + $0x28] sm:$0xff] }
  0x41   :  { %944 = vmatprep.subr.bf16.mxu0 %v943_v4  ;;  %v949_v12 = vpack.c.bf16 %v101_v11, %v99_v10  ;;  %v94_v13 = vld [vmem:[%s1518_s11] sm:$0xff]  ;;  %956 = vmatpush3.bf16.msra.mxu1 %v955_v37  ;;  %v325_v4 = vld [vmem:[%s1509_s13 + $0x30] sm:$0xff]  ;;  %v326_v5 = vld [vmem:[%s1509_s13 + $0x38] sm:$0xff] }
  0x42   :  { %946 = vmatpush1.bf16.msra.mxu0 %v945_v8  ;;  %957 = vmatprep.subr.bf16.mxu1 %v1139_v34  ;;  %v724_v54 = vld [vmem:[%s1502_s6] ss:$0 sm:$0xff]  ;;  %v973_v6 = vpack.c.bf16 %v326_v5, %v325_v4  ;;  %v328_v8 = vld [vmem:[%s1509_s13 + $0x48] sm:$0xff]  ;;  %v330_v15 = vld [vmem:[%s1509_s13 + $0x58] sm:$0xff] }
  0x43   :  { %948 = vmatprep.subr.bf16.mxu0 %v947_v9  ;;  %v319_v58 = vld [vmem:[%s1509_s13] sm:$0xff]  ;;  %v979_v16 = vpack.c.bf16 %v330_v15, %v329_v14  ;;  %v332_v18 = vld [vmem:[%s1509_s13 + $0x68] sm:$0xff]  ;;  %v412_v33 = vld [vmem:[#allocation6 + $0x30] sm:$0xff] }
  0x44   :  { %v964_v61 = vpack.c.bf16 %v320_v59, %v319_v58  ;;  %v323_v1 = vld [vmem:[%s1509_s13 + $0x20] sm:$0xff]  ;;  %v411_v31 = vld [vmem:[#allocation6 + $0x28] sm:$0xff]  ;;  %v413_v35 = vld [vmem:[#allocation6 + $0x38] sm:$0xff] }
  0x45   :  { %959 = vmatpush3.bf16.msra.mxu1 %v958_v40  ;;  %v970_v3 = vpack.c.bf16 %v324_v2, %v323_v1  ;;  %v327_v7 = vld [vmem:[%s1509_s13 + $0x40] sm:$0xff]  ;;  %v997_v36 = vpack.c.bf16 %v413_v35, %v412_v33  ;;  %v415_v38 = vld [vmem:[#allocation6 + $0x48] sm:$0xff]  ;;  %v416_v40 = vld [vmem:[#allocation6 + $0x50] sm:$0xff] }
  0x46   :  { %950 = vmatpush1.bf16.msra.mxu0 %v949_v12  ;;  %960 = vmatprep.subr.bf16.mxu1 %v1139_v34  ;;  %v976_v9 = vpack.c.bf16 %v328_v8, %v327_v7  ;;  %v331_v17 = vld [vmem:[%s1509_s13 + $0x60] sm:$0xff]  ;;  %v417_v41 = vld [vmem:[#allocation6 + $0x58] sm:$0xff]  ;;  %v498_v58 = vld [vmem:[%s1503_s7 + $0x30] sm:$0xff] }
  0x47   :  { %963 = vmatprep.subr.bf16.mxu0 %v1139_v34  ;;  %v414_v37 = vld [vmem:[#allocation6 + $0x40] sm:$0xff]  ;;  %v1003_v42 = vpack.c.bf16 %v417_v41, %v416_v40  ;;  %v499_v59 = vld [vmem:[%s1503_s7 + $0x38] sm:$0xff]  ;;  %v501_v62 = vld [vmem:[%s1503_s7 + $0x48] sm:$0xff] }
  0x48   :  { %v1000_v39 = vpack.c.bf16 %v415_v38, %v414_v37  ;;  %v1021_v60 = vpack.c.bf16 %v499_v59, %v498_v58  ;;  %v502_v1 = vld [vmem:[%s1503_s7 + $0x50] sm:$0xff]  ;;  %v503_v2 = vld [vmem:[%s1503_s7 + $0x58] sm:$0xff]  ;;  %v504_v4 = vld [vmem:[%s1503_s7 + $0x60] sm:$0xff] }
  0x49   :  { %721 = vmatmul.mubr.msk.f32.vlgmr.msra.gmra.mrb[0].mxu0 %vm115_vm0, %v94_v13  ;;  %962 = vmatpush3.bf16.msra.mxu1 %v961_v43  ;;  %v418_v43 = vld [vmem:[#allocation6 + $0x60] sm:$0xff]  ;;  %v505_v5 = vld [vmem:[%s1503_s7 + $0x68] sm:$0xff]  ;;  %v506_v7 = vld [vmem:[%s1503_s7 + $0x70] sm:$0xff] }
  0x4a   :  { %851 = vmatprep.mubr.msk.f32.mxu0 %vm1140_vm2, %v1138_v0  ;;  %987 = vmatprep.subr.bf16.mxu1 %v1139_v34  ;;  %v507_v8 = vld [vmem:[%s1503_s7 + $0x78] sm:$0xff]  ;;  %v621_v37 = vld [vmem:[#allocation4 + $0x30] sm:$0xff] }
  0x4b   :  { %965 = vmatpush3.bf16.msra.mxu0 %v964_v61  ;;  %v500_v61 = vld [vmem:[%s1503_s7 + $0x40] sm:$0xff]  ;;  %v622_v38 = vld [vmem:[#allocation4 + $0x38] sm:$0xff] }
  0x4c   :  { %966 = vmatprep.subr.bf16.mxu0 %v1139_v34 }
  0x4f   :  { %968 = vmatpush3.bf16.msra.mxu0 %v967_v63  ;;  %v1024_v63 = vpack.c.bf16 %v501_v62, %v500_v61 }
  0x50   :  { %969 = vmatprep.subr.bf16.mxu0 %v1139_v34 }
  0x53   :  { %971 = vmatpush3.bf16.msra.mxu0 %v970_v3  ;;  %v1027_v3 = vpack.c.bf16 %v503_v2, %v502_v1 }
  0x54   :  { %972 = vmatprep.subr.bf16.mxu0 %v1139_v34 }
  0x57   :  { %974 = vmatpush3.bf16.msra.mxu0 %v973_v6  ;;  %v1030_v6 = vpack.c.bf16 %v505_v5, %v504_v4 }
  0x58   :  { %975 = vmatprep.subr.bf16.mxu0 %v1139_v34 }
  0x5b   :  { %977 = vmatpush3.bf16.msra.mxu0 %v976_v9  ;;  %v1033_v9 = vpack.c.bf16 %v507_v8, %v506_v7 }
  0x5c   :  { %978 = vmatprep.subr.bf16.mxu0 %v1139_v34 }
  0x5f   :  { %980 = vmatpush3.bf16.msra.mxu0 %v979_v16  ;;  %v726_v16 = vld [vmem:[%s1504_s8] ss:$0 sm:$0xff] }
  0x60   :  { %981 = vmatprep.subr.bf16.mxu0 %v1139_v34 }
 0x11c   :  { %v185_v21 = vpop.f32.mrb[0].mxu0 }
 0x11d   :  { %v1314_v22 = vadd.f32 %v185_v21, %v108_v19  ;;  %v187_v23 = vpop.f32.mrb[1].mxu0  ;;  %v982_v19 = vpack.c.bf16 %v332_v18, %v331_v17  ;;  %v334_v21 = vld [vmem:[%s1509_s13 + $0x78] sm:$0xff] }
 0x11e   :  { %v188_v24 = vadd.f32 %v187_v23, %v112_v20  ;;  %v333_v20 = vld [vmem:[%s1509_s13 + $0x70] sm:$0xff] }
 0x11f   :  { %703 = vst [vmem:[%s1511_s15] sm:$0xff] %v1314_v22  ;;  %983 = vmatpush3.bf16.msra.mxu0 %v982_v19  ;;  %v985_v23 = vpack.c.bf16 %v334_v21, %v333_v20 }
 0x120   :  { %v193_v25 = vsel %vm192_vm1, %v188_v24, 0.0  ;;  %984 = vmatprep.subr.bf16.mxu0 %v1139_v34 }
 0x121   :  { %194 = vadd.xlane.f32.xlu0 %v193_v25  ;;  %v407_v25 = vld [vmem:[#allocation6 + $0x8] sm:$0xff] }
 0x123   :  { %986 = vmatpush3.bf16.msra.mxu0 %v985_v23 }
 0x124   :  { %1011 = vmatprep.subr.bf16.mxu0 %v1139_v34 }
 0x1ae   :  { %v195_v26 = vpop.xlane.xlu0 %194 }
 0x1af   :  { %v197_v27 = vmul.f32 0.015625, %v195_v26  ;;  %v408_v26 = vld [vmem:[#allocation6 + $0x10] sm:$0xff] }
 0x1b1   :  { %v198_v28 = vsub.f32 %v188_v24, %v197_v27  ;;  %v406_v24 = vld [vmem:[#allocation6] sm:$0xff] }
 0x1b2   :  { %v988_v27 = vpack.c.bf16 %v407_v25, %v406_v24 }
 0x1b3   :  { %v199_v29 = vmul.f32 %v198_v28, %v198_v28 }
 0x1b5   :  { %v200_v30 = vsel %vm192_vm1, %v199_v29, 0.0 }
 0x1b6   :  { %201 = vadd.xlane.f32.xlu0 %v200_v30  ;;  %v410_v30 = vld [vmem:[#allocation6 + $0x20] sm:$0xff] }
 0x1b7   :  { %v994_v32 = vpack.c.bf16 %v411_v31, %v410_v30  ;;  %v619_v31 = vld [vmem:[#allocation4 + $0x20] sm:$0xff] }
 0x243   :  { %v202_v44 = vpop.xlane.xlu0 %201 }
 0x244   :  { %v203_v45 = vmul.f32 0.015625, %v202_v44  ;;  %v419_v44 = vld [vmem:[#allocation6 + $0x68] sm:$0xff] }
 0x246   :  { %v204_v46 = vadd.f32 1e-05, %v203_v45  ;;  %v1006_v45 = vpack.c.bf16 %v419_v44, %v418_v43  ;;  %v727_v44 = vld [vmem:[%s1505_s9] ss:$0 sm:$0xff] }
 0x248   :  { %1055 = vrsqrt.f32 %v204_v46 }
 0x252   :  { %v1056_v47 = vpop.eup %1055 }
 0x253   :  { %v206_v49 = vmul.f32 %v1056_v47, %v198_v28  ;;  %v409_v28 = vld [vmem:[#allocation6 + $0x18] sm:$0xff]  ;;  %v492_v47 = vld [vmem:[%s1503_s7] sm:$0xff] }
 0x254   :  { %v991_v29 = vpack.c.bf16 %v409_v28, %v408_v26  ;;  %v615_v26 = vld [vmem:[#allocation4] sm:$0xff]  ;;  %v617_v28 = vld [vmem:[#allocation4 + $0x10] sm:$0xff] }
 0x255   :  { %v213_v51 = vmul.f32 %v722_v48, %v206_v49  ;;  %v493_v48 = vld [vmem:[%s1503_s7 + $0x8] sm:$0xff] }
 0x257   :  { %v220_v52 = vadd.f32 %v723_v50, %v213_v51  ;;  %v1012_v50 = vpack.c.bf16 %v493_v48, %v492_v47 }
 0x259   :  { %v221_v53 = vmax.f32 %v220_v52, 0.0  ;;  %v494_v52 = vld [vmem:[%s1503_s7 + $0x10] sm:$0xff] }
 0x25b   :  { %817 = vmatmul.mubr.msk.f32.vlgmr.msra.gmra.mrb[0].mxu1 %vm192_vm1, %v221_v53  ;;  %v495_v53 = vld [vmem:[%s1503_s7 + $0x18] sm:$0xff] }
 0x25c   :  { %886 = vmatprep.mubr.msk.f32.mxu1 %vm1140_vm2, %v1138_v0  ;;  %989 = vmatpush3.bf16.msra.mxu1 %v988_v27  ;;  %v616_v27 = vld [vmem:[#allocation4 + $0x8] sm:$0xff] }
 0x25d   :  { %990 = vmatprep.subr.bf16.mxu1 %v1139_v34 }
 0x260   :  { %992 = vmatpush3.bf16.msra.mxu1 %v991_v29  ;;  %v618_v29 = vld [vmem:[#allocation4 + $0x18] sm:$0xff] }
 0x261   :  { %993 = vmatprep.subr.bf16.mxu1 %v1139_v34  ;;  %v1039_v30 = vpack.c.bf16 %v618_v29, %v617_v28 }
 0x264   :  { %995 = vmatpush3.bf16.msra.mxu1 %v994_v32  ;;  %v620_v32 = vld [vmem:[#allocation4 + $0x28] sm:$0xff] }
 0x265   :  { %996 = vmatprep.subr.bf16.mxu1 %v1139_v34  ;;  %v1042_v33 = vpack.c.bf16 %v620_v32, %v619_v31 }
 0x268   :  { %998 = vmatpush3.bf16.msra.mxu1 %v997_v36 }
 0x269   :  { %999 = vmatprep.subr.bf16.mxu1 %v1139_v34 }
 0x26c   :  { %1001 = vmatpush3.bf16.msra.mxu1 %v1000_v39  ;;  %v1045_v39 = vpack.c.bf16 %v622_v38, %v621_v37 }
 0x26d   :  { %1002 = vmatprep.subr.bf16.mxu1 %v1139_v34 }
 0x270   :  { %1004 = vmatpush3.bf16.msra.mxu1 %v1003_v42 }
 0x271   :  { %1005 = vmatprep.subr.bf16.mxu1 %v1139_v34 }
 0x274   :  { %1007 = vmatpush3.bf16.msra.mxu1 %v1006_v45 }
 0x275   :  { %1008 = vmatprep.subr.bf16.mxu1 %v1139_v34 }
 0x32e   :  { %v306_v55 = vpop.f32.mrb[0].mxu1 }
 0x32f   :  { %v307_v56 = vadd.f32 %v724_v54, %v306_v55  ;;  %v818_v57 = vpop.f32.mrb[1].mxu1  ;;  %v1015_v54 = vpack.c.bf16 %v495_v53, %v494_v52  ;;  %v496_v55 = vld [vmem:[%s1503_s7 + $0x20] sm:$0xff] }
 0x331   :  { %310 = vmax.xlane.f32.xlu1 %v307_v56 }
 0x3be   :  { %v311_v10 = vpop.xlane.xlu1 %310 }
 0x3bf   :  { %v312_v11 = vsub.f32 %v307_v56, %v311_v10  ;;  %v497_v56 = vld [vmem:[%s1503_s7 + $0x28] sm:$0xff]  ;;  %v420_v10 = vld [vmem:[#allocation6 + $0x70] sm:$0xff] }
 0x3c0   :  { %v1018_v57 = vpack.c.bf16 %v497_v56, %v496_v55 }
 0x3c1   :  { %v313_v12 = vmul.f32 1.442695, %v312_v11  ;;  %v421_v11 = vld [vmem:[#allocation6 + $0x78] sm:$0xff] }
 0x3c3   :  { %1057 = vpow2.f32 %v313_v12  ;;  %v1009_v12 = vpack.c.bf16 %v421_v11, %v420_v10 }
 0x3c5   :  { %1010 = vmatpush3.bf16.msra.mxu1 %v1009_v12 }
 0x3c6   :  { %1035 = vmatprep.subr.bf16.mxu1 %v1139_v34 }
 0x3cd   :  { %v1058_v13 = vpop.eup %1057 }
 0x3ce   :  { %315 = vadd.xlane.f32.xlu1 %v1058_v13 }
 0x45b   :  { %v316_v46 = vpop.xlane.xlu1 %315 }
 0x45c   :  { %1059 = vrcp.f32 %v316_v46  ;;  %v728_v46 = vld [vmem:[%s1506_s10] ss:$0 sm:$0xff] }
 0x466   :  { %v1060_v49 = vpop.eup %1059 }
 0x467   :  { %v318_v51 = vmul.f32 %v1060_v49, %v1058_v13  ;;  %v729_v49 = vld [vmem:[%s1508_s12] ss:$0 sm:$0xff] }
 0x469   :  { %852 = vmatmul.mubr.f32.vlgmr.msra.gmra.mrb[2].mxu0 %v318_v51  ;;  %706 = vst [vmem:[%s1513_s17] sm:$0xff] %v318_v51 }
 0x46a   :  { %1013 = vmatpush3.bf16.msra.mxu0 %v1012_v50  ;;  %921 = vmatprep.mubr.msk.f32.mxu0 %vm1140_vm2, %v1138_v0 }
 0x46b   :  { %1014 = vmatprep.subr.bf16.mxu0 %v1139_v34 }
 0x46e   :  { %1016 = vmatpush3.bf16.msra.mxu0 %v1015_v54 }
 0x46f   :  { %1017 = vmatprep.subr.bf16.mxu0 %v1139_v34 }
 0x472   :  { %1019 = vmatpush3.bf16.msra.mxu0 %v1018_v57 }
 0x473   :  { %1020 = vmatprep.subr.bf16.mxu0 %v1139_v34 }
 0x476   :  { %1022 = vmatpush3.bf16.msra.mxu0 %v1021_v60 }
 0x477   :  { %1023 = vmatprep.subr.bf16.mxu0 %v1139_v34 }
 0x47a   :  { %1025 = vmatpush3.bf16.msra.mxu0 %v1024_v63 }
 0x47b   :  { %1026 = vmatprep.subr.bf16.mxu0 %v1139_v34 }
 0x47e   :  { %1028 = vmatpush3.bf16.msra.mxu0 %v1027_v3 }
 0x47f   :  { %1029 = vmatprep.subr.bf16.mxu0 %v1139_v34 }
 0x482   :  { %1031 = vmatpush3.bf16.msra.mxu0 %v1030_v6 }
 0x483   :  { %1032 = vmatprep.subr.bf16.mxu0 %v1139_v34 }
 0x486   :  { %1034 = vmatpush3.bf16.msra.mxu0 %v1033_v9 }
 0x489   :  { %922 = vmatmul.mubr.f32.vlgmr.msra.gmra.mrb[4].mxu0 %v1314_v22 }
 0x53c   :  { %v401_v13 = vpop.f32.mrb[2].mxu0 }
 0x53d   :  { %v405_v14 = vmul.f32 %v401_v13, %v1314_v22  ;;  %v853_v15 = vpop.f32.mrb[3].mxu0 }
 0x53f   :  { %887 = vmatmul.mubr.f32.vlgmr.msra.gmra.mrb[2].mxu1 %v405_v14 }
 0x540   :  { %940 = vmatprep.mubr.msk.f32.mxu1 %vm1140_vm2, %v1138_v0  ;;  %v1036_v0 = vpack.c.bf16 %v616_v27, %v615_v26 }
 0x542   :  { %1037 = vmatpush3.bf16.msra.mxu1 %v1036_v0 }
 0x543   :  { %1038 = vmatprep.subr.bf16.mxu1 %v1139_v34 }
 0x546   :  { %1040 = vmatpush3.bf16.msra.mxu1 %v1039_v30 }
 0x547   :  { %1041 = vmatprep.subr.bf16.mxu1 %v1139_v34 }
 0x54a   :  { %1043 = vmatpush3.bf16.msra.mxu1 %v1042_v33 }
 0x54b   :  { %1044 = vmatprep.subr.bf16.mxu1 %v1139_v34 }
 0x54e   :  { %1046 = vmatpush3.bf16.msra.mxu1 %v1045_v39 }
 0x55c   :  { %v581_v17 = vpop.f32.mrb[4].mxu0 }
 0x55d   :  { %v582_v18 = vadd.f32 %v726_v16, %v581_v17  ;;  %v923_v19 = vpop.f32.mrb[5].mxu0 }
 0x55f   :  { %v587_v20 = vsel %vm192_vm1, %v582_v18, 0.0 }
 0x560   :  { %588 = vadd.xlane.f32.xlu0 %v587_v20 }
 0x5ed   :  { %v589_v21 = vpop.xlane.xlu0 %588 }
 0x5ee   :  { %v590_v23 = vmul.f32 0.015625, %v589_v21 }
 0x5f0   :  { %v591_v24 = vsub.f32 %v582_v18, %v590_v23 }
 0x5f2   :  { %v592_v25 = vmul.f32 %v591_v24, %v591_v24 }
 0x5f4   :  { %v593_v22 = vsel %vm192_vm1, %v592_v25, 0.0 }
 0x5f5   :  { %594 = vadd.xlane.f32.xlu1 %v593_v22 }
 0x612   :  { %v488_v35 = vpop.f32.mrb[2].mxu1 }
 0x613   :  { %705 = vst [vmem:[%s1512_s16 + $0x8] sm:$0xff] %v488_v35  ;;  %v888_v36 = vpop.f32.mrb[3].mxu1 }
 0x682   :  { %v595_v40 = vpop.xlane.xlu1 %594 }
 0x683   :  { %v596_v41 = vmul.f32 0.015625, %v595_v40 }
 0x685   :  { %v597_v42 = vadd.f32 1e-05, %v596_v41 }
 0x687   :  { %1061 = vrsqrt.f32 %v597_v42 }
 0x691   :  { %v1062_v43 = vpop.eup %1061 }
 0x692   :  { %v599_v45 = vmul.f32 %v1062_v43, %v591_v24 }
 0x694   :  { %v606_v47 = vmul.f32 %v727_v44, %v599_v45 }
 0x696   :  { %v613_v34 = vadd.f32 %v728_v46, %v606_v47 }
 0x698   :  { %v614_v48 = vmax.f32 %v613_v34, 0.0 }
 0x69a   :  { %941 = vmatmul.mubr.msk.f32.vlgmr.msra.gmra.mrb[4].mxu1 %vm192_vm1, %v614_v48 }
 0x76d   :  { %v699_v50 = vpop.f32.mrb[4].mxu1 }
 0x76e   :  { %v700_v51 = vadd.f32 %v729_v49, %v699_v50  ;;  %v942_v52 = vpop.f32.mrb[5].mxu1 }
 0x770   :  { %704 = vst [vmem:[%s1512_s16] sm:$0xff] %v700_v51 }
 0x771   :  { %719 = vsyncpa [#allocation3], 1 }
 0x772   :  { %720 = vsyncpa [#allocation5], 1 }

// kernel: enhanced_reasoning_forward.1
= control target key start
LH: loop header
LB: loop body
LE: loop exit
PB: predicated region body
PF: predicated region fallthrough
CT: control target
= control target key end

     0   :  { %s1496_s0 = inlined_call_operand.vmem [shape: f32[8,32], index: 0, kind: input, shape index: {}]   ;;  %s1497_s1 = inlined_call_operand.vmem [shape: f32[32,192], index: 1, kind: input, shape index: {}]   ;;  %s1498_s2 = inlined_call_operand.vmem [shape: f32[1,192], index: 2, kind: input, shape index: {}]   ;;  %s1499_s3 = inlined_call_operand.vmem [shape: f32[1,64], index: 3, kind: input, shape index: {}]   ;;  %s1500_s4 = inlined_call_operand.vmem [shape: f32[1,64], index: 4, kind: input, shape index: {}]   ;;  %s1501_s5 = inlined_call_operand.hbm [shape: f32[64,128], index: 5, kind: input, shape index: {}]   ;;  %s1502_s6 = inlined_call_operand.vmem [shape: f32[1,128], index: 6, kind: input, shape index: {}]   ;;  %s1503_s7 = inlined_call_operand.vmem [shape: f32[128,64], index: 7, kind: input, shape index: {}]   ;;  %s1504_s8 = inlined_call_operand.vmem [shape: f32[1,64], index: 8, kind: input, shape index: {}]   ;;  %s1505_s9 = inlined_call_operand.vmem [shape: f32[1,64], index: 9, kind: input, shape index: {}]   ;;  %s1506_s10 = inlined_call_operand.vmem [shape: f32[1,64], index: 10, kind: input, shape index: {}]   ;;  %s1507_s11 = inlined_call_operand.hbm [shape: f32[64,128], index: 11, kind: input, shape index: {}]   ;;  %s1508_s12 = inlined_call_operand.vmem [shape: f32[1,128], index: 12, kind: input, shape index: {}]   ;;  %s1509_s13 = inlined_call_operand.vmem [shape: f32[128,128], index: 13, kind: input, shape index: {}]   ;;  %s1510_s14 = inlined_call_operand.hbm [shape: f32[128,128], index: 14, kind: input, shape index: {}]   ;;  %s1511_s15 = inlined_call_operand.vmem [shape: f32[8,128], index: 15, kind: output, shape index: {0}]   ;;  %s1512_s16 = inlined_call_operand.vmem [shape: f32[8,256], index: 16, kind: output, shape index: {1}]   ;;  %s1513_s17 = inlined_call_operand.vmem [shape: f32[8,128], index: 17, kind: output, shape index: {2}]  }
   0x1   :  { %1515 = sst [smem:[#allocation9_spill]] %s1496_s0 }
   0x2   :  { %1516 = sst [smem:[#allocation10_spill]] %s1497_s1 }
   0x3   :  { %23 = vsyncpa [#allocation3], 0 }
   0x4   :  { %24 = vsyncpa [#allocation5], 0  ;;  %s1133_s24 = smov [#allocation4]   ;;  %s1134_s26 = smov [#allocation2]  }
   0x5   :  { %s62_s25 = sshll.u32 %s1133_s24, 4  ;;  %s40_s27 = sshll.u32 %s1134_s26, 4  ;;  %s63_s25 = int_to_ptr.vmem [resolvable:$true] %s62_s25  ;;  %s1231_s27 = int_to_ptr.vmem [resolvable:$true] %s40_s27 }
   0x6   :  { %s1063_s0 = scalar_lea.hbm %s1507_s11, 1024 }
   0x7   :  { %p1064_p0 = scmp.ne.s32.totalorder %s1507_s11, %s1063_s0  ;;  %p1067_p1 = scmp.lt.u32.totalorder %s1063_s0, %s1507_s11 }
   0x9   :  { %p1069_p2 = pnand %p1067_p1, %p1064_p0 }
   0xb   :  { %1072 = shalt.err (!%p1069_p2)
}
   0xc   :  { %s1073_s20 = scalar_lea.vmem %s63_s25, 1024  ;;  %p1078_p4 = scmp.lt.s32.totalorder %s63_s25, %s63_s25 }
   0xd   :  { %p1074_p3 = scmp.ne.s32.totalorder %s63_s25, %s1073_s20  ;;  %p1079_p5 = scmp.lt.s32.totalorder %s1073_s20, %s1073_s20 }
   0xf   :  { %p1080_p6 = por %p1079_p5, %p1078_p4 }
  0x11   :  { %p1081_p7 = pnand %p1080_p6, %p1074_p3 }
  0x13   :  { %1084 = shalt.err (!%p1081_p7)
}
  0x14   :  { %s1135_s21 = smov 128   ;;  %s1136_s22 = smov 8  }
  0x15   :  { %68 = dma.hbm_to_vmem [thread:$0]  %s1507_s11, 1024, %s63_s25, [#allocation5], %s1135_s21, %s1135_s21, %s1136_s22  }
  0x16   :  { %s1085_s29 = scalar_lea.hbm %s1501_s5, 1024 }
  0x17   :  { %p1086_p8 = scmp.ne.s32.totalorder %s1501_s5, %s1085_s29  ;;  %p1089_p9 = scmp.lt.u32.totalorder %s1085_s29, %s1501_s5 }
  0x19   :  { %p1091_p10 = pnand %p1089_p9, %p1086_p8 }
  0x1b   :  { %1094 = shalt.err (!%p1091_p10)
}
  0x1c   :  { %s1095_s1 = scalar_lea.vmem %s1231_s27, 1024  ;;  %p1100_p12 = scmp.lt.s32.totalorder %s1231_s27, %s1231_s27 }
  0x1d   :  { %p1096_p11 = scmp.ne.s32.totalorder %s1231_s27, %s1095_s1  ;;  %p1101_p13 = scmp.lt.s32.totalorder %s1095_s1, %s1095_s1 }
  0x1f   :  { %p1102_p0 = por %p1101_p13, %p1100_p12 }
  0x21   :  { %p1103_p1 = pnand %p1102_p0, %p1096_p11 }
  0x23   :  { %1106 = shalt.err (!%p1103_p1)
}
  0x24   :  { %46 = dma.hbm_to_vmem [thread:$0]  %s1501_s5, 1024, %s1231_s27, [#allocation3], %s1135_s21, %s1135_s21, %s1136_s22  }
  0x25   :  { %s1137_s20 = smov [#allocation6]   ;;  %s1107_s28 = scalar_lea.hbm %s1510_s14, 2048 }
  0x26   :  { %s78_s23 = sshll.u32 %s1137_s20, 4  ;;  %p1108_p2 = scmp.ne.s32.totalorder %s1510_s14, %s1107_s28  ;;  %s79_s23 = int_to_ptr.vmem [resolvable:$true] %s78_s23 }
  0x27   :  { %p1111_p3 = scmp.lt.u32.totalorder %s1107_s28, %s1510_s14 }
  0x29   :  { %p1113_p4 = pnand %p1111_p3, %p1108_p2 }
  0x2b   :  { %1116 = shalt.err (!%p1113_p4)
}
  0x2c   :  { %s1117_s19 = scalar_lea.vmem %s79_s23, 2048  ;;  %p1122_p6 = scmp.lt.s32.totalorder %s79_s23, %s79_s23 }
  0x2d   :  { %p1118_p5 = scmp.ne.s32.totalorder %s79_s23, %s1117_s19  ;;  %p1123_p7 = scmp.lt.s32.totalorder %s1117_s19, %s1117_s19 }
  0x2f   :  { %p1124_p8 = por %p1123_p7, %p1122_p6 }
  0x31   :  { %p1125_p9 = pnand %p1124_p8, %p1118_p5 }
  0x33   :  { %1128 = shalt.err (!%p1125_p9)
}
  0x34   :  { %84 = dma.hbm_to_vmem [thread:$0]  %s1510_s14, 2048, %s79_s23, [#allocation5], %s1135_s21, %s1135_s21, %s1136_s22  }
  0x35   :  { %1129 = dma.done.wait [#allocation3], 1024  }
  0x36   :  { %1130 = vsyncadd [#allocation3], 4294966272 }
  0x37   :  { %1131 = dma.done.wait [#allocation5], 3072  }
  0x38   :  { %1132 = vsyncadd [#allocation5], 4294964224  ;;  %v1138_v0 = vmov 0.0   ;;  %s1517_s25 = sld [smem:[#allocation10_spill]]  ;;  %s1518_s11 = sld [smem:[#allocation9_spill]]  ;;  %vm115_vm0 = vcmask 261120   ;;  %v105_v14 = vlaneseq }
  0x39   :  { %183 = vmatprep.mubr.f32.mxu0 %v1138_v0  ;;  %v103_v17 = vld [vmem:[%s1498_s2] sm:$0x3]  ;;  %vm192_vm1 = vcmask 523264   ;;  %v223_v32 = vld [vmem:[#allocation2 + $0x8] sm:$0xff]  ;;  %v224_v33 = vld [vmem:[#allocation2 + $0x10] sm:$0xff]  ;;  %v1139_v34 = vmov 0.0|0.0  }
  0x3a   :  { %v106_v15 = vshrl.u32 %v105_v14, 7  ;;  %v222_v31 = vld [vmem:[#allocation2] sm:$0xff]  ;;  %951 = vmatprep.subr.bf16.mxu1 %v1139_v34  ;;  %v225_v36 = vld [vmem:[#allocation2 + $0x18] sm:$0xff]  ;;  %vm1140_vm2 = vmmov 0   ;;  %v227_v39 = vld [vmem:[#allocation2 + $0x28] sm:$0xff] }
  0x3b   :  { %v952_v35 = vpack.c.bf16 %v223_v32, %v222_v31  ;;  %816 = vmatprep.mubr.msk.f32.mxu1 %vm1140_vm2, %v1138_v0  ;;  %v955_v37 = vpack.c.bf16 %v225_v36, %v224_v33  ;;  %v226_v38 = vld [vmem:[#allocation2 + $0x20] sm:$0xff]  ;;  %v228_v41 = vld [vmem:[#allocation2 + $0x30] sm:$0xff]  ;;  %v229_v42 = vld [vmem:[#allocation2 + $0x38] sm:$0xff] }
  0x3c   :  { %v107_v16 = vsub.s32 0, %v106_v15  ;;  %v111_v18 = vsub.s32 1, %v106_v15  ;;  %v958_v40 = vpack.c.bf16 %v227_v39, %v226_v38  ;;  %v961_v43 = vpack.c.bf16 %v229_v42, %v228_v41  ;;  %v722_v48 = vld [vmem:[%s1499_s3] ss:$0 sm:$0xff]  ;;  %v320_v59 = vld [vmem:[%s1509_s13 + $0x8] sm:$0xff]  ;;  %v321_v60 = vld [vmem:[%s1509_s13 + $0x10] sm:$0xff] }
  0x3d   :  { %953 = vmatpush3.bf16.msra.mxu1 %v952_v35  ;;  %v723_v50 = vld [vmem:[%s1500_s4] ss:$0 sm:$0xff]  ;;  %v322_v62 = vld [vmem:[%s1509_s13 + $0x18] sm:$0xff]  ;;  %v329_v14 = vld [vmem:[%s1509_s13 + $0x50] sm:$0xff] }
  0x3e   :  { %v96_v1 = vld [vmem:[%s1517_s25 + $0x8] sm:$0xff]  ;;  %v98_v2 = vld [vmem:[%s1517_s25 + $0x18] sm:$0xff]  ;;  %v95_v3 = vld [vmem:[%s1517_s25] sm:$0xff]  ;;  %v108_v19 = vrot.slane %v103_v17, %v107_v16  ;;  %v112_v20 = vrot.slane %v103_v17, %v111_v18  ;;  %954 = vmatprep.subr.bf16.mxu1 %v1139_v34  ;;  %v967_v63 = vpack.c.bf16 %v322_v62, %v321_v60 }
  0x3f   :  { %v943_v4 = vpack.c.bf16 %v98_v2, %v96_v1  ;;  %v97_v5 = vld [vmem:[%s1517_s25 + $0x10] sm:$0xff]  ;;  %v100_v6 = vld [vmem:[%s1517_s25 + $0x28] sm:$0xff]  ;;  %v102_v7 = vld [vmem:[%s1517_s25 + $0x38] sm:$0xff] }
  0x40   :  { %v945_v8 = vpack.c.bf16 %v97_v5, %v95_v3  ;;  %v947_v9 = vpack.c.bf16 %v102_v7, %v100_v6  ;;  %v99_v10 = vld [vmem:[%s1517_s25 + $0x20] sm:$0xff]  ;;  %v101_v11 = vld [vmem:[%s1517_s25 + $0x30] sm:$0xff]  ;;  %v324_v2 = vld [vmem:[%s1509_s13 + $0x28] sm:$0xff] }
  0x41   :  { %944 = vmatprep.subr.bf16.mxu0 %v943_v4  ;;  %v949_v12 = vpack.c.bf16 %v101_v11, %v99_v10  ;;  %v94_v13 = vld [vmem:[%s1518_s11] sm:$0xff]  ;;  %956 = vmatpush3.bf16.msra.mxu1 %v955_v37  ;;  %v325_v4 = vld [vmem:[%s1509_s13 + $0x30] sm:$0xff]  ;;  %v326_v5 = vld [vmem:[%s1509_s13 + $0x38] sm:$0xff] }
  0x42   :  { %946 = vmatpush1.bf16.msra.mxu0 %v945_v8  ;;  %957 = vmatprep.subr.bf16.mxu1 %v1139_v34  ;;  %v724_v54 = vld [vmem:[%s1502_s6] ss:$0 sm:$0xff]  ;;  %v973_v6 = vpack.c.bf16 %v326_v5, %v325_v4  ;;  %v328_v8 = vld [vmem:[%s1509_s13 + $0x48] sm:$0xff]  ;;  %v330_v15 = vld [vmem:[%s1509_s13 + $0x58] sm:$0xff] }
  0x43   :  { %948 = vmatprep.subr.bf16.mxu0 %v947_v9  ;;  %v319_v58 = vld [vmem:[%s1509_s13] sm:$0xff]  ;;  %v979_v16 = vpack.c.bf16 %v330_v15, %v329_v14  ;;  %v332_v18 = vld [vmem:[%s1509_s13 + $0x68] sm:$0xff]  ;;  %v412_v33 = vld [vmem:[#allocation6 + $0x30] sm:$0xff] }
  0x44   :  { %v964_v61 = vpack.c.bf16 %v320_v59, %v319_v58  ;;  %v323_v1 = vld [vmem:[%s1509_s13 + $0x20] sm:$0xff]  ;;  %v411_v31 = vld [vmem:[#allocation6 + $0x28] sm:$0xff]  ;;  %v413_v35 = vld [vmem:[#allocation6 + $0x38] sm:$0xff] }
  0x45   :  { %959 = vmatpush3.bf16.msra.mxu1 %v958_v40  ;;  %v970_v3 = vpack.c.bf16 %v324_v2, %v323_v1  ;;  %v327_v7 = vld [vmem:[%s1509_s13 + $0x40] sm:$0xff]  ;;  %v997_v36 = vpack.c.bf16 %v413_v35, %v412_v33  ;;  %v415_v38 = vld [vmem:[#allocation6 + $0x48] sm:$0xff]  ;;  %v416_v40 = vld [vmem:[#allocation6 + $0x50] sm:$0xff] }
  0x46   :  { %950 = vmatpush1.bf16.msra.mxu0 %v949_v12  ;;  %960 = vmatprep.subr.bf16.mxu1 %v1139_v34  ;;  %v976_v9 = vpack.c.bf16 %v328_v8, %v327_v7  ;;  %v331_v17 = vld [vmem:[%s1509_s13 + $0x60] sm:$0xff]  ;;  %v417_v41 = vld [vmem:[#allocation6 + $0x58] sm:$0xff]  ;;  %v498_v58 = vld [vmem:[%s1503_s7 + $0x30] sm:$0xff] }
  0x47   :  { %963 = vmatprep.subr.bf16.mxu0 %v1139_v34  ;;  %v414_v37 = vld [vmem:[#allocation6 + $0x40] sm:$0xff]  ;;  %v1003_v42 = vpack.c.bf16 %v417_v41, %v416_v40  ;;  %v499_v59 = vld [vmem:[%s1503_s7 + $0x38] sm:$0xff]  ;;  %v501_v62 = vld [vmem:[%s1503_s7 + $0x48] sm:$0xff] }
  0x48   :  { %v1000_v39 = vpack.c.bf16 %v415_v38, %v414_v37  ;;  %v1021_v60 = vpack.c.bf16 %v499_v59, %v498_v58  ;;  %v502_v1 = vld [vmem:[%s1503_s7 + $0x50] sm:$0xff]  ;;  %v503_v2 = vld [vmem:[%s1503_s7 + $0x58] sm:$0xff]  ;;  %v504_v4 = vld [vmem:[%s1503_s7 + $0x60] sm:$0xff] }
  0x49   :  { %721 = vmatmul.mubr.msk.f32.vlgmr.msra.gmra.mrb[0].mxu0 %vm115_vm0, %v94_v13  ;;  %962 = vmatpush3.bf16.msra.mxu1 %v961_v43  ;;  %v418_v43 = vld [vmem:[#allocation6 + $0x60] sm:$0xff]  ;;  %v505_v5 = vld [vmem:[%s1503_s7 + $0x68] sm:$0xff]  ;;  %v506_v7 = vld [vmem:[%s1503_s7 + $0x70] sm:$0xff] }
  0x4a   :  { %851 = vmatprep.mubr.msk.f32.mxu0 %vm1140_vm2, %v1138_v0  ;;  %987 = vmatprep.subr.bf16.mxu1 %v1139_v34  ;;  %v507_v8 = vld [vmem:[%s1503_s7 + $0x78] sm:$0xff]  ;;  %v621_v37 = vld [vmem:[#allocation4 + $0x30] sm:$0xff] }
  0x4b   :  { %965 = vmatpush3.bf16.msra.mxu0 %v964_v61  ;;  %v500_v61 = vld [vmem:[%s1503_s7 + $0x40] sm:$0xff]  ;;  %v622_v38 = vld [vmem:[#allocation4 + $0x38] sm:$0xff] }
  0x4c   :  { %966 = vmatprep.subr.bf16.mxu0 %v1139_v34 }
  0x4f   :  { %968 = vmatpush3.bf16.msra.mxu0 %v967_v63  ;;  %v1024_v63 = vpack.c.bf16 %v501_v62, %v500_v61 }
  0x50   :  { %969 = vmatprep.subr.bf16.mxu0 %v1139_v34 }
  0x53   :  { %971 = vmatpush3.bf16.msra.mxu0 %v970_v3  ;;  %v1027_v3 = vpack.c.bf16 %v503_v2, %v502_v1 }
  0x54   :  { %972 = vmatprep.subr.bf16.mxu0 %v1139_v34 }
  0x57   :  { %974 = vmatpush3.bf16.msra.mxu0 %v973_v6  ;;  %v1030_v6 = vpack.c.bf16 %v505_v5, %v504_v4 }
  0x58   :  { %975 = vmatprep.subr.bf16.mxu0 %v1139_v34 }
  0x5b   :  { %977 = vmatpush3.bf16.msra.mxu0 %v976_v9  ;;  %v1033_v9 = vpack.c.bf16 %v507_v8, %v506_v7 }
  0x5c   :  { %978 = vmatprep.subr.bf16.mxu0 %v1139_v34 }
  0x5f   :  { %980 = vmatpush3.bf16.msra.mxu0 %v979_v16  ;;  %v726_v16 = vld [vmem:[%s1504_s8] ss:$0 sm:$0xff] }
  0x60   :  { %981 = vmatprep.subr.bf16.mxu0 %v1139_v34 }
 0x11c   :  { %v185_v21 = vpop.f32.mrb[0].mxu0 }
 0x11d   :  { %v1314_v22 = vadd.f32 %v185_v21, %v108_v19  ;;  %v187_v23 = vpop.f32.mrb[1].mxu0  ;;  %v982_v19 = vpack.c.bf16 %v332_v18, %v331_v17  ;;  %v334_v21 = vld [vmem:[%s1509_s13 + $0x78] sm:$0xff] }
 0x11e   :  { %v188_v24 = vadd.f32 %v187_v23, %v112_v20  ;;  %v333_v20 = vld [vmem:[%s1509_s13 + $0x70] sm:$0xff] }
 0x11f   :  { %703 = vst [vmem:[%s1511_s15] sm:$0xff] %v1314_v22  ;;  %983 = vmatpush3.bf16.msra.mxu0 %v982_v19  ;;  %v985_v23 = vpack.c.bf16 %v334_v21, %v333_v20 }
 0x120   :  { %v193_v25 = vsel %vm192_vm1, %v188_v24, 0.0  ;;  %984 = vmatprep.subr.bf16.mxu0 %v1139_v34 }
 0x121   :  { %194 = vadd.xlane.f32.xlu0 %v193_v25  ;;  %v407_v25 = vld [vmem:[#allocation6 + $0x8] sm:$0xff] }
 0x123   :  { %986 = vmatpush3.bf16.msra.mxu0 %v985_v23 }
 0x124   :  { %1011 = vmatprep.subr.bf16.mxu0 %v1139_v34 }
 0x1ae   :  { %v195_v26 = vpop.xlane.xlu0 %194 }
 0x1af   :  { %v197_v27 = vmul.f32 0.015625, %v195_v26  ;;  %v408_v26 = vld [vmem:[#allocation6 + $0x10] sm:$0xff] }
 0x1b1   :  { %v198_v28 = vsub.f32 %v188_v24, %v197_v27  ;;  %v406_v24 = vld [vmem:[#allocation6] sm:$0xff] }
 0x1b2   :  { %v988_v27 = vpack.c.bf16 %v407_v25, %v406_v24 }
 0x1b3   :  { %v199_v29 = vmul.f32 %v198_v28, %v198_v28 }
 0x1b5   :  { %v200_v30 = vsel %vm192_vm1, %v199_v29, 0.0 }
 0x1b6   :  { %201 = vadd.xlane.f32.xlu0 %v200_v30  ;;  %v410_v30 = vld [vmem:[#allocation6 + $0x20] sm:$0xff] }
 0x1b7   :  { %v994_v32 = vpack.c.bf16 %v411_v31, %v410_v30  ;;  %v619_v31 = vld [vmem:[#allocation4 + $0x20] sm:$0xff] }
 0x243   :  { %v202_v44 = vpop.xlane.xlu0 %201 }
 0x244   :  { %v203_v45 = vmul.f32 0.015625, %v202_v44  ;;  %v419_v44 = vld [vmem:[#allocation6 + $0x68] sm:$0xff] }
 0x246   :  { %v204_v46 = vadd.f32 1e-05, %v203_v45  ;;  %v1006_v45 = vpack.c.bf16 %v419_v44, %v418_v43  ;;  %v727_v44 = vld [vmem:[%s1505_s9] ss:$0 sm:$0xff] }
 0x248   :  { %1055 = vrsqrt.f32 %v204_v46 }
 0x252   :  { %v1056_v47 = vpop.eup %1055 }
 0x253   :  { %v206_v49 = vmul.f32 %v1056_v47, %v198_v28  ;;  %v409_v28 = vld [vmem:[#allocation6 + $0x18] sm:$0xff]  ;;  %v492_v47 = vld [vmem:[%s1503_s7] sm:$0xff] }
 0x254   :  { %v991_v29 = vpack.c.bf16 %v409_v28, %v408_v26  ;;  %v615_v26 = vld [vmem:[#allocation4] sm:$0xff]  ;;  %v617_v28 = vld [vmem:[#allocation4 + $0x10] sm:$0xff] }
 0x255   :  { %v213_v51 = vmul.f32 %v722_v48, %v206_v49  ;;  %v493_v48 = vld [vmem:[%s1503_s7 + $0x8] sm:$0xff] }
 0x257   :  { %v220_v52 = vadd.f32 %v723_v50, %v213_v51  ;;  %v1012_v50 = vpack.c.bf16 %v493_v48, %v492_v47 }
 0x259   :  { %v221_v53 = vmax.f32 %v220_v52, 0.0  ;;  %v494_v52 = vld [vmem:[%s1503_s7 + $0x10] sm:$0xff] }
 0x25b   :  { %817 = vmatmul.mubr.msk.f32.vlgmr.msra.gmra.mrb[0].mxu1 %vm192_vm1, %v221_v53  ;;  %v495_v53 = vld [vmem:[%s1503_s7 + $0x18] sm:$0xff] }
 0x25c   :  { %886 = vmatprep.mubr.msk.f32.mxu1 %vm1140_vm2, %v1138_v0  ;;  %989 = vmatpush3.bf16.msra.mxu1 %v988_v27  ;;  %v616_v27 = vld [vmem:[#allocation4 + $0x8] sm:$0xff] }
 0x25d   :  { %990 = vmatprep.subr.bf16.mxu1 %v1139_v34 }
 0x260   :  { %992 = vmatpush3.bf16.msra.mxu1 %v991_v29  ;;  %v618_v29 = vld [vmem:[#allocation4 + $0x18] sm:$0xff] }
 0x261   :  { %993 = vmatprep.subr.bf16.mxu1 %v1139_v34  ;;  %v1039_v30 = vpack.c.bf16 %v618_v29, %v617_v28 }
 0x264   :  { %995 = vmatpush3.bf16.msra.mxu1 %v994_v32  ;;  %v620_v32 = vld [vmem:[#allocation4 + $0x28] sm:$0xff] }
 0x265   :  { %996 = vmatprep.subr.bf16.mxu1 %v1139_v34  ;;  %v1042_v33 = vpack.c.bf16 %v620_v32, %v619_v31 }
 0x268   :  { %998 = vmatpush3.bf16.msra.mxu1 %v997_v36 }
 0x269   :  { %999 = vmatprep.subr.bf16.mxu1 %v1139_v34 }
 0x26c   :  { %1001 = vmatpush3.bf16.msra.mxu1 %v1000_v39  ;;  %v1045_v39 = vpack.c.bf16 %v622_v38, %v621_v37 }
 0x26d   :  { %1002 = vmatprep.subr.bf16.mxu1 %v1139_v34 }
 0x270   :  { %1004 = vmatpush3.bf16.msra.mxu1 %v1003_v42 }
 0x271   :  { %1005 = vmatprep.subr.bf16.mxu1 %v1139_v34 }
 0x274   :  { %1007 = vmatpush3.bf16.msra.mxu1 %v1006_v45 }
 0x275   :  { %1008 = vmatprep.subr.bf16.mxu1 %v1139_v34 }
 0x32e   :  { %v306_v55 = vpop.f32.mrb[0].mxu1 }
 0x32f   :  { %v307_v56 = vadd.f32 %v724_v54, %v306_v55  ;;  %v818_v57 = vpop.f32.mrb[1].mxu1  ;;  %v1015_v54 = vpack.c.bf16 %v495_v53, %v494_v52  ;;  %v496_v55 = vld [vmem:[%s1503_s7 + $0x20] sm:$0xff] }
 0x331   :  { %310 = vmax.xlane.f32.xlu1 %v307_v56 }
 0x3be   :  { %v311_v10 = vpop.xlane.xlu1 %310 }
 0x3bf   :  { %v312_v11 = vsub.f32 %v307_v56, %v311_v10  ;;  %v497_v56 = vld [vmem:[%s1503_s7 + $0x28] sm:$0xff]  ;;  %v420_v10 = vld [vmem:[#allocation6 + $0x70] sm:$0xff] }
 0x3c0   :  { %v1018_v57 = vpack.c.bf16 %v497_v56, %v496_v55 }
 0x3c1   :  { %v313_v12 = vmul.f32 1.442695, %v312_v11  ;;  %v421_v11 = vld [vmem:[#allocation6 + $0x78] sm:$0xff] }
 0x3c3   :  { %1057 = vpow2.f32 %v313_v12  ;;  %v1009_v12 = vpack.c.bf16 %v421_v11, %v420_v10 }
 0x3c5   :  { %1010 = vmatpush3.bf16.msra.mxu1 %v1009_v12 }
 0x3c6   :  { %1035 = vmatprep.subr.bf16.mxu1 %v1139_v34 }
 0x3cd   :  { %v1058_v13 = vpop.eup %1057 }
 0x3ce   :  { %315 = vadd.xlane.f32.xlu1 %v1058_v13 }
 0x45b   :  { %v316_v46 = vpop.xlane.xlu1 %315 }
 0x45c   :  { %1059 = vrcp.f32 %v316_v46  ;;  %v728_v46 = vld [vmem:[%s1506_s10] ss:$0 sm:$0xff] }
 0x466   :  { %v1060_v49 = vpop.eup %1059 }
 0x467   :  { %v318_v51 = vmul.f32 %v1060_v49, %v1058_v13  ;;  %v729_v49 = vld [vmem:[%s1508_s12] ss:$0 sm:$0xff] }
 0x469   :  { %852 = vmatmul.mubr.f32.vlgmr.msra.gmra.mrb[2].mxu0 %v318_v51  ;;  %706 = vst [vmem:[%s1513_s17] sm:$0xff] %v318_v51 }
 0x46a   :  { %1013 = vmatpush3.bf16.msra.mxu0 %v1012_v50  ;;  %921 = vmatprep.mubr.msk.f32.mxu0 %vm1140_vm2, %v1138_v0 }
 0x46b   :  { %1014 = vmatprep.subr.bf16.mxu0 %v1139_v34 }
 0x46e   :  { %1016 = vmatpush3.bf16.msra.mxu0 %v1015_v54 }
 0x46f   :  { %1017 = vmatprep.subr.bf16.mxu0 %v1139_v34 }
 0x472   :  { %1019 = vmatpush3.bf16.msra.mxu0 %v1018_v57 }
 0x473   :  { %1020 = vmatprep.subr.bf16.mxu0 %v1139_v34 }
 0x476   :  { %1022 = vmatpush3.bf16.msra.mxu0 %v1021_v60 }
 0x477   :  { %1023 = vmatprep.subr.bf16.mxu0 %v1139_v34 }
 0x47a   :  { %1025 = vmatpush3.bf16.msra.mxu0 %v1024_v63 }
 0x47b   :  { %1026 = vmatprep.subr.bf16.mxu0 %v1139_v34 }
 0x47e   :  { %1028 = vmatpush3.bf16.msra.mxu0 %v1027_v3 }
 0x47f   :  { %1029 = vmatprep.subr.bf16.mxu0 %v1139_v34 }
 0x482   :  { %1031 = vmatpush3.bf16.msra.mxu0 %v1030_v6 }
 0x483   :  { %1032 = vmatprep.subr.bf16.mxu0 %v1139_v34 }
 0x486   :  { %1034 = vmatpush3.bf16.msra.mxu0 %v1033_v9 }
 0x489   :  { %922 = vmatmul.mubr.f32.vlgmr.msra.gmra.mrb[4].mxu0 %v1314_v22 }
 0x53c   :  { %v401_v13 = vpop.f32.mrb[2].mxu0 }
 0x53d   :  { %v405_v14 = vmul.f32 %v401_v13, %v1314_v22  ;;  %v853_v15 = vpop.f32.mrb[3].mxu0 }
 0x53f   :  { %887 = vmatmul.mubr.f32.vlgmr.msra.gmra.mrb[2].mxu1 %v405_v14 }
 0x540   :  { %940 = vmatprep.mubr.msk.f32.mxu1 %vm1140_vm2, %v1138_v0  ;;  %v1036_v0 = vpack.c.bf16 %v616_v27, %v615_v26 }
 0x542   :  { %1037 = vmatpush3.bf16.msra.mxu1 %v1036_v0 }
 0x543   :  { %1038 = vmatprep.subr.bf16.mxu1 %v1139_v34 }
 0x546   :  { %1040 = vmatpush3.bf16.msra.mxu1 %v1039_v30 }
 0x547   :  { %1041 = vmatprep.subr.bf16.mxu1 %v1139_v34 }
 0x54a   :  { %1043 = vmatpush3.bf16.msra.mxu1 %v1042_v33 }
 0x54b   :  { %1044 = vmatprep.subr.bf16.mxu1 %v1139_v34 }
 0x54e   :  { %1046 = vmatpush3.bf16.msra.mxu1 %v1045_v39 }
 0x55c   :  { %v581_v17 = vpop.f32.mrb[4].mxu0 }
 0x55d   :  { %v582_v18 = vadd.f32 %v726_v16, %v581_v17  ;;  %v923_v19 = vpop.f32.mrb[5].mxu0 }
 0x55f   :  { %v587_v20 = vsel %vm192_vm1, %v582_v18, 0.0 }
 0x560   :  { %588 = vadd.xlane.f32.xlu0 %v587_v20 }
 0x5ed   :  { %v589_v21 = vpop.xlane.xlu0 %588 }
 0x5ee   :  { %v590_v23 = vmul.f32 0.015625, %v589_v21 }
 0x5f0   :  { %v591_v24 = vsub.f32 %v582_v18, %v590_v23 }
 0x5f2   :  { %v592_v25 = vmul.f32 %v591_v24, %v591_v24 }
 0x5f4   :  { %v593_v22 = vsel %vm192_vm1, %v592_v25, 0.0 }
 0x5f5   :  { %594 = vadd.xlane.f32.xlu1 %v593_v22 }
 0x612   :  { %v488_v35 = vpop.f32.mrb[2].mxu1 }
 0x613   :  { %705 = vst [vmem:[%s1512_s16 + $0x8] sm:$0xff] %v488_v35  ;;  %v888_v36 = vpop.f32.mrb[3].mxu1 }
 0x682   :  { %v595_v40 = vpop.xlane.xlu1 %594 }
 0x683   :  { %v596_v41 = vmul.f32 0.015625, %v595_v40 }
 0x685   :  { %v597_v42 = vadd.f32 1e-05, %v596_v41 }
 0x687   :  { %1061 = vrsqrt.f32 %v597_v42 }
 0x691   :  { %v1062_v43 = vpop.eup %1061 }
 0x692   :  { %v599_v45 = vmul.f32 %v1062_v43, %v591_v24 }
 0x694   :  { %v606_v47 = vmul.f32 %v727_v44, %v599_v45 }
 0x696   :  { %v613_v34 = vadd.f32 %v728_v46, %v606_v47 }
 0x698   :  { %v614_v48 = vmax.f32 %v613_v34, 0.0 }
 0x69a   :  { %941 = vmatmul.mubr.msk.f32.vlgmr.msra.gmra.mrb[4].mxu1 %vm192_vm1, %v614_v48 }
 0x76d   :  { %v699_v50 = vpop.f32.mrb[4].mxu1 }
 0x76e   :  { %v700_v51 = vadd.f32 %v729_v49, %v699_v50  ;;  %v942_v52 = vpop.f32.mrb[5].mxu1 }
 0x770   :  { %704 = vst [vmem:[%s1512_s16] sm:$0xff] %v700_v51 }
 0x771   :  { %719 = vsyncpa [#allocation3], 1 }
 0x772   :  { %720 = vsyncpa [#allocation5], 1 }

</bundles_post_ra>
